<compile_context>
chip_gen: v6e
topology: v6e:2x2x1
jax: 0.10.0
libtpu: 0.0.40
codegen_flags: <defaults>
</compile_context>

<pallas_src>
import jax
import jax.numpy as jnp
from jax import lax
from jax.experimental import pallas as pl
from jax.experimental.pallas import tpu as pltpu


def gcn_kernel(a_ref, x_ref, w1_ref, b1_ref, w2_ref, b2_ref, o_ref, ax_ref, acc_ref):
    k = pl.program_id(0)

    @pl.when(k == 0)
    def _():
        # Hoisted aggregation: AX = A_hat @ X computed once, stored as bf16 for the
        # streamed-weight matmuls (A(XW) == (AX)W since these are plain matmuls).
        ax = jnp.dot(a_ref[...], x_ref[...], preferred_element_type=jnp.float32)
        ax_ref[...] = ax.astype(jnp.bfloat16)
        acc_ref[...] = jnp.zeros_like(acc_ref)

    # ---- layer 1, feature-column tile k:  H_k = relu((AX) @ W1[:, k] + b1[k]) ----
    h = jnp.dot(ax_ref[...], w1_ref[...], preferred_element_type=jnp.float32) + b1_ref[...]
    h = jnp.maximum(h, 0.0)
    # dropout with p=0.0 is the identity (train and eval) -> no-op.

    # ---- layer 2, partial contraction over the same tile:  acc += H_k @ W2[k, :] ----
    acc_ref[...] += jnp.dot(h.astype(jnp.bfloat16), w2_ref[...],
                            preferred_element_type=jnp.float32)

    # ---- epilogue on the last tile:  Y = A_hat @ acc + b2 (bf16 MXU feed, f32 acc) ----
    @pl.when(k == pl.num_programs(0) - 1)
    def _():
        y = jnp.dot(a_ref[...], acc_ref[...].astype(jnp.bfloat16),
                    preferred_element_type=jnp.float32) + b2_ref[...]
        o_ref[...] = y.astype(o_ref.dtype)


def build_normalized_adjacency(edge_index, num_nodes, dtype=jnp.float32):
    """Dense D^{-1/2}(A+I)D^{-1/2} matching PyG gcn_norm (default edge weights).

    Duplicate (non-self-loop) edges scatter-add; self-loops end up with weight
    exactly 1 (add_remaining_self_loops semantics)."""
    src = edge_index[0]
    dst = edge_index[1]
    not_loop = (src != dst).astype(dtype)
    a = jnp.zeros((num_nodes, num_nodes), dtype=dtype)
    a = a.at[dst, src].add(not_loop)          # message j -> i; duplicates sum
    a = a + jnp.eye(num_nodes, dtype=dtype)   # remaining self-loops, weight 1
    deg = a.sum(axis=1)
    dinv = jnp.where(deg > 0, lax.rsqrt(deg), 0.0)
    return (dinv[:, None] * a) * dinv[None, :]


def _pick_f_tile(f_hid):
    """Chip-aware feature-tile width.

    v5e: DMA-bound on the ~2.9us of weight traffic -> finer tiles (256, 3 steps)
         keep the pipeline prologue short.
    v6e/v7x: per-step fixed overhead exceeds the weight DMA -> 384 (2 steps)."""
    try:
        kind = jax.devices()[0].device_kind.lower()
    except Exception:
        kind = ""
    if "v5" in kind and f_hid % 256 == 0:
        return 256
    if f_hid % 384 == 0:
        return 384
    return f_hid


def gcn_forward(x, edge_index, w1, b1, w2, b2, *, f_tile=None):
    n, f_in = x.shape
    f_hid = w1.shape[1]
    f_out = w2.shape[1]
    if f_tile is None:
        f_tile = _pick_f_tile(f_hid)
    assert w2.shape[0] == f_hid and f_hid % f_tile == 0

    # bf16 for every HBM->VMEM transfer and MXU feed (f32 accumulation inside).
    a_hat = build_normalized_adjacency(edge_index, n, dtype=jnp.float32).astype(jnp.bfloat16)
    x_bf = x.astype(jnp.bfloat16)
    w1_bf = w1.astype(jnp.bfloat16)
    w2_bf = w2.astype(jnp.bfloat16)

    grid = (f_hid // f_tile,)

    return pl.pallas_call(
        gcn_kernel,
        out_shape=jax.ShapeDtypeStruct((n, f_out), jnp.float32),
        grid=grid,
        in_specs=[
            pl.BlockSpec((n, n), lambda k: (0, 0)),           # A_hat (bf16, resident)
            pl.BlockSpec((n, f_in), lambda k: (0, 0)),        # X (bf16, resident)
            pl.BlockSpec((f_in, f_tile), lambda k: (0, k)),   # W1 column tile (streamed)
            pl.BlockSpec((1, f_tile), lambda k: (0, k)),      # b1 tile
            pl.BlockSpec((f_tile, f_out), lambda k: (k, 0)),  # W2 row tile (streamed)
            pl.BlockSpec((1, f_out), lambda k: (0, 0)),       # b2 (resident)
        ],
        out_specs=pl.BlockSpec((n, f_out), lambda k: (0, 0)),  # resident output tile
        scratch_shapes=[
            pltpu.VMEM((n, f_in), jnp.bfloat16),   # AX (hoisted aggregation)
            pltpu.VMEM((n, f_out), jnp.float32),   # layer-2 accumulator
        ],
        compiler_params=pltpu.CompilerParams(
            dimension_semantics=("arbitrary",),    # grid axis is a hidden-dim reduction
            vmem_limit_bytes=32 << 20,
        ),
    )(a_hat, x_bf, w1_bf, b1, w2_bf, b2)


def init_params(key, f_in=768, f_out=768):
    # Glorot-uniform weights (deterministic), zero biases — matches GCNConv shapes.
    k1, k2 = jax.random.split(key)
    limit = jnp.sqrt(6.0 / (f_in + f_out)).astype(jnp.float32)
    w1 = jax.random.uniform(k1, (f_in, f_out), jnp.float32, -limit, limit)
    w2 = jax.random.uniform(k2, (f_in, f_out), jnp.float32, -limit, limit)
    b1 = jnp.zeros((1, f_out), jnp.float32)
    b2 = jnp.zeros((1, f_out), jnp.float32)
    return w1, b1, w2, b2


if __name__ == "__main__":
    key = jax.random.PRNGKey(0)
    k_x, k_e, k_p = jax.random.split(key, 3)

    N = 16          # number of graph nodes (small)
    F = 768         # feature size fixed by the module (GCNConv(768, 768))
    E = 40          # number of edges

    x = jax.random.normal(k_x, (N, F), jnp.float32)
    edge_index = jax.random.randint(k_e, (2, E), 0, N, jnp.int32)

    w1, b1, w2, b2 = init_params(k_p, F, F)

    out = gcn_forward(x, edge_index, w1, b1, w2, b2)
    out = jax.block_until_ready(out)

    # Pure-JAX reference mirroring the kernel's bf16 operand quantization
    # (f32 accumulation everywhere, identical math otherwise).
    a_hat = build_normalized_adjacency(edge_index, N)
    a_b = a_hat.astype(jnp.bfloat16).astype(jnp.float32)
    xb = x.astype(jnp.bfloat16).astype(jnp.float32)
    w1b = w1.astype(jnp.bfloat16).astype(jnp.float32)
    w2b = w2.astype(jnp.bfloat16).astype(jnp.float32)
    ax = (a_b @ xb).astype(jnp.bfloat16).astype(jnp.float32)
    h_ref = jnp.maximum(ax @ w1b + b1, 0.0)
    hb = h_ref.astype(jnp.bfloat16).astype(jnp.float32)
    acc = (hb @ w2b).astype(jnp.bfloat16).astype(jnp.float32)
    ref = a_b @ acc + b2

    assert out.shape == (N, F)
    assert jnp.allclose(out, ref, atol=1e-2, rtol=1e-2), float(jnp.max(jnp.abs(out - ref)))

    print("KERNEL_OK")
</pallas_src>

<mosaic_0001>
module attributes {stable_mosaic.version = 11 : i64} {
  func.func @gcn_kernel(%arg0: i32, %arg1: memref<16x16xbf16, #tpu.memory_space<vmem>>, %arg2: memref<16x768xbf16, #tpu.memory_space<vmem>>, %arg3: memref<768x384xbf16, #tpu.memory_space<vmem>>, %arg4: memref<1x384xf32, #tpu.memory_space<vmem>>, %arg5: memref<384x768xbf16, #tpu.memory_space<vmem>>, %arg6: memref<1x768xf32, #tpu.memory_space<vmem>>, %arg7: memref<16x768xf32, #tpu.memory_space<vmem>>, %arg8: memref<16x768xbf16, #tpu.memory_space<vmem>>, %arg9: memref<16x768xf32, #tpu.memory_space<vmem>>) attributes {dimension_semantics = [#tpu.dimension_semantics<arbitrary>], iteration_bounds = array<i64: 2>, scalar_prefetch = 0 : i64, scratch_operands = 2 : i64, tpu.core_type = #tpu.core_type<tc>, window_params = [{pipeline_mode = #tpu.pipeline_mode<synchronous>, transform_indices = @transform_0, window_bounds = array<i64: 16, 16>}, {pipeline_mode = #tpu.pipeline_mode<synchronous>, transform_indices = @transform_1, window_bounds = array<i64: 16, 768>}, {transform_indices = @transform_2, window_bounds = array<i64: 768, 384>}, {transform_indices = @transform_3, window_bounds = array<i64: 1, 384>}, {transform_indices = @transform_4, window_bounds = array<i64: 384, 768>}, {pipeline_mode = #tpu.pipeline_mode<synchronous>, transform_indices = @transform_5, window_bounds = array<i64: 1, 768>}, {pipeline_mode = #tpu.pipeline_mode<synchronous>, transform_indices = @transform_6, window_bounds = array<i64: 16, 768>}]} {
    %c0_i32 = arith.constant 0 : i32
    %0 = arith.cmpi eq, %arg0, %c0_i32 : i32
    %1 = arith.extui %0 : i1 to i32
    %c0_i32_0 = arith.constant 0 : i32
    %2 = arith.cmpi ne, %1, %c0_i32_0 : i32
    scf.if %2 {
      %c0_15 = arith.constant 0 : index
      %c0_16 = arith.constant 0 : index
      %20 = vector.load %arg1[%c0_15, %c0_16] : memref<16x16xbf16, #tpu.memory_space<vmem>>, vector<16x16xbf16>
      %c0_17 = arith.constant 0 : index
      %c0_18 = arith.constant 0 : index
      %21 = vector.load %arg2[%c0_17, %c0_18] : memref<16x768xbf16, #tpu.memory_space<vmem>>, vector<16x768xbf16>
      %cst_19 = arith.constant dense<0.000000e+00> : vector<16x768xf32>
      %22 = tpu.matmul %20, %21, %cst_19 {dimension_numbers = #tpu.dot_dimension_numbers<[1], [0], [0], [1], [0, 0, 1, 1], [], []>} : vector<16x16xbf16>, vector<16x768xbf16>, vector<16x768xf32> -> vector<16x768xf32>
      %23 = arith.truncf %22 : vector<16x768xf32> to vector<16x768xbf16>
      %c0_20 = arith.constant 0 : index
      %c0_21 = arith.constant 0 : index
      %24 = vector.load %arg8[%c0_20, %c0_21] : memref<16x768xbf16, #tpu.memory_space<vmem>>, vector<16x768xbf16>
      tpu.vector_store %arg8[%c0_20, %c0_21], %23 {strides = array<i32>} : memref<16x768xbf16, #tpu.memory_space<vmem>>, vector<16x768xbf16>,
      %cst_22 = arith.constant 0.000000e+00 : f32
      %25 = vector.broadcast %cst_22 : f32 to vector<16x768xf32>
      %c0_23 = arith.constant 0 : index
      %c0_24 = arith.constant 0 : index
      %26 = vector.load %arg9[%c0_23, %c0_24] : memref<16x768xf32, #tpu.memory_space<vmem>>, vector<16x768xf32>
      tpu.vector_store %arg9[%c0_23, %c0_24], %25 {strides = array<i32>} : memref<16x768xf32, #tpu.memory_space<vmem>>, vector<16x768xf32>,
    } else {
    }
    %c0 = arith.constant 0 : index
    %c0_1 = arith.constant 0 : index
    %3 = vector.load %arg8[%c0, %c0_1] : memref<16x768xbf16, #tpu.memory_space<vmem>>, vector<16x768xbf16>
    %c0_2 = arith.constant 0 : index
    %c0_3 = arith.constant 0 : index
    %4 = vector.load %arg3[%c0_2, %c0_3] : memref<768x384xbf16, #tpu.memory_space<vmem>>, vector<768x384xbf16>
    %cst = arith.constant dense<0.000000e+00> : vector<16x384xf32>
    %5 = tpu.matmul %3, %4, %cst {dimension_numbers = #tpu.dot_dimension_numbers<[1], [0], [0], [1], [0, 0, 1, 1], [], []>} : vector<16x768xbf16>, vector<768x384xbf16>, vector<16x384xf32> -> vector<16x384xf32>
    %c0_4 = arith.constant 0 : index
    %c0_5 = arith.constant 0 : index
    %6 = vector.load %arg4[%c0_4, %c0_5] : memref<1x384xf32, #tpu.memory_space<vmem>>, vector<1x384xf32>
    %7 = vector.broadcast %6 : vector<1x384xf32> to vector<16x384xf32>
    %8 = arith.addf %5, %7 : vector<16x384xf32>
    %cst_6 = arith.constant 0.000000e+00 : f32
    %9 = vector.broadcast %cst_6 : f32 to vector<16x384xf32>
    %10 = arith.maximumf %8, %9 : vector<16x384xf32>
    %c0_7 = arith.constant 0 : index
    %c0_8 = arith.constant 0 : index
    %11 = vector.load %arg9[%c0_7, %c0_8] : memref<16x768xf32, #tpu.memory_space<vmem>>, vector<16x768xf32>
    %12 = arith.truncf %10 : vector<16x384xf32> to vector<16x384xbf16>
    %c0_9 = arith.constant 0 : index
    %c0_10 = arith.constant 0 : index
    %13 = vector.load %arg5[%c0_9, %c0_10] : memref<384x768xbf16, #tpu.memory_space<vmem>>, vector<384x768xbf16>
    %cst_11 = arith.constant dense<0.000000e+00> : vector<16x768xf32>
    %14 = tpu.matmul %12, %13, %cst_11 {dimension_numbers = #tpu.dot_dimension_numbers<[1], [0], [0], [1], [0, 0, 1, 1], [], []>} : vector<16x384xbf16>, vector<384x768xbf16>, vector<16x768xf32> -> vector<16x768xf32>
    %15 = arith.addf %11, %14 : vector<16x768xf32>
    %c0_12 = arith.constant 0 : index
    %c0_13 = arith.constant 0 : index
    %16 = vector.load %arg9[%c0_12, %c0_13] : memref<16x768xf32, #tpu.memory_space<vmem>>, vector<16x768xf32>
    tpu.vector_store %arg9[%c0_12, %c0_13], %15 {strides = array<i32>} : memref<16x768xf32, #tpu.memory_space<vmem>>, vector<16x768xf32>,
    %c1_i32 = arith.constant 1 : i32
    %17 = arith.cmpi eq, %arg0, %c1_i32 : i32
    %18 = arith.extui %17 : i1 to i32
    %c0_i32_14 = arith.constant 0 : i32
    %19 = arith.cmpi ne, %18, %c0_i32_14 : i32
    scf.if %19 {
      %c0_15 = arith.constant 0 : index
      %c0_16 = arith.constant 0 : index
      %20 = vector.load %arg1[%c0_15, %c0_16] : memref<16x16xbf16, #tpu.memory_space<vmem>>, vector<16x16xbf16>
      %c0_17 = arith.constant 0 : index
      %c0_18 = arith.constant 0 : index
      %21 = vector.load %arg9[%c0_17, %c0_18] : memref<16x768xf32, #tpu.memory_space<vmem>>, vector<16x768xf32>
      %22 = arith.truncf %21 : vector<16x768xf32> to vector<16x768xbf16>
      %cst_19 = arith.constant dense<0.000000e+00> : vector<16x768xf32>
      %23 = tpu.matmul %20, %22, %cst_19 {dimension_numbers = #tpu.dot_dimension_numbers<[1], [0], [0], [1], [0, 0, 1, 1], [], []>} : vector<16x16xbf16>, vector<16x768xbf16>, vector<16x768xf32> -> vector<16x768xf32>
      %c0_20 = arith.constant 0 : index
      %c0_21 = arith.constant 0 : index
      %24 = vector.load %arg6[%c0_20, %c0_21] : memref<1x768xf32, #tpu.memory_space<vmem>>, vector<1x768xf32>
      %25 = vector.broadcast %24 : vector<1x768xf32> to vector<16x768xf32>
      %26 = arith.addf %23, %25 : vector<16x768xf32>
      %c0_22 = arith.constant 0 : index
      %c0_23 = arith.constant 0 : index
      %27 = vector.load %arg7[%c0_22, %c0_23] : memref<16x768xf32, #tpu.memory_space<vmem>>, vector<16x768xf32>
      tpu.vector_store %arg7[%c0_22, %c0_23], %26 {strides = array<i32>} : memref<16x768xf32, #tpu.memory_space<vmem>>, vector<16x768xf32>,
    } else {
    }
    return
  }
  func.func @transform_0(%arg0: i32) -> (i32, i32) {
    %c0_i32 = arith.constant 0 : i32
    %c0_i32_0 = arith.constant 0 : i32
    %c0_i32_1 = arith.constant 0 : i32
    return %c0_i32, %c0_i32_0 : i32, i32
  }
  func.func @transform_1(%arg0: i32) -> (i32, i32) {
    %c0_i32 = arith.constant 0 : i32
    %c0_i32_0 = arith.constant 0 : i32
    %c0_i32_1 = arith.constant 0 : i32
    return %c0_i32, %c0_i32_0 : i32, i32
  }
  func.func @transform_2(%arg0: i32) -> (i32, i32) {
    %c0_i32 = arith.constant 0 : i32
    %c0_i32_0 = arith.constant 0 : i32
    return %c0_i32, %arg0 : i32, i32
  }
  func.func @transform_3(%arg0: i32) -> (i32, i32) {
    %c0_i32 = arith.constant 0 : i32
    %c0_i32_0 = arith.constant 0 : i32
    return %c0_i32, %arg0 : i32, i32
  }
  func.func @transform_4(%arg0: i32) -> (i32, i32) {
    %c0_i32 = arith.constant 0 : i32
    %c0_i32_0 = arith.constant 0 : i32
    return %arg0, %c0_i32 : i32, i32
  }
  func.func @transform_5(%arg0: i32) -> (i32, i32) {
    %c0_i32 = arith.constant 0 : i32
    %c0_i32_0 = arith.constant 0 : i32
    %c0_i32_1 = arith.constant 0 : i32
    return %c0_i32, %c0_i32_0 : i32, i32
  }
  func.func @transform_6(%arg0: i32) -> (i32, i32) {
    %c0_i32 = arith.constant 0 : i32
    %c0_i32_0 = arith.constant 0 : i32
    %c0_i32_1 = arith.constant 0 : i32
    return %c0_i32, %c0_i32_0 : i32, i32
  }
}

</mosaic_0001>

<bundles_post_ra>
// kernel: tpu_custom_call.1
= control target key start
LH: loop header
LB: loop body
LE: loop exit
PB: predicated region body
PF: predicated region fallthrough
CT: control target
= control target key end

     0   :  { %s5199_s0 = inlined_call_operand.hbm [shape: bf16[16,16], index: 0, kind: input, shape index: {}]   ;;  %s5200_s1 = inlined_call_operand.hbm [shape: bf16[16,768], index: 1, kind: input, shape index: {}]   ;;  %s5201_s2 = inlined_call_operand.hbm [shape: bf16[768,768], index: 2, kind: input, shape index: {}]   ;;  %s5202_s3 = inlined_call_operand.hbm [shape: f32[1,768], index: 3, kind: input, shape index: {}]   ;;  %s5203_s4 = inlined_call_operand.hbm [shape: bf16[768,768], index: 4, kind: input, shape index: {}]   ;;  %s5204_s5 = inlined_call_operand.hbm [shape: f32[1,768], index: 5, kind: input, shape index: {}]   ;;  %s5205_s6 = inlined_call_operand.hbm [shape: f32[16,768], index: 6, kind: output, shape index: {}]  }
   0x1   :  { %5216 = sst [smem:[#allocation22_spill]] %s5199_s0 }
   0x2   :  { %5217 = sst [smem:[#allocation23_spill]] %s5201_s2 }
   0x3   :  { %11 = vsyncpa [#allocation5], 0 }
   0x4   :  { %12 = vsyncpa [#allocation8], 0 }
   0x5   :  { %13 = vsyncpa [#allocation6], 0  ;;  %s4606_s21 = smov 0   ;;  %s4608_s22 = smov 0  }
   0x6   :  { %s4610_s23 = smov 0   ;;  %s4612_s24 = smov 0  }
   0x7 LB: > { %5218 = sst [smem:[#allocation19_spill]] %s4546_s23  ;;  %s4625_s25 = sadd.s32 4294967295, %s4550_s24   ;;  %s4550_s24 = sphi %s4612_s24, %s5242_s24   ;;  %s4546_s23 = sphi %s4610_s23, %s5244_s23   ;;  %s4542_s22 = sphi %s4608_s22, %s5246_s22   ;;  %s4538_s21 = sphi %s4606_s21, %s5245_s21  }
   0x8   : > { %s4628_s26 = sadd.s32 1, %s4550_s24   ;;  %s68_s28 = sadd.s32 1, %s4546_s23 }
   0x9   : > { %5219 = sst [smem:[#allocation20_spill]] %s4628_s26  ;;  %s65_s27 = ssub.s32 %s4550_s24, %s4628_s26 }
   0xa   : > { %p66_p0 = scmp.eq.s32.totalorder %s65_s27, 0  ;;  %p75_p1 = scmp.ne.s32.totalorder %s4546_s23, %s4542_s22 }
   0xb   : > { %p76_p2 = scmp.eq.s32.totalorder %s4550_s24, 0  ;;  %p81_p3 = scmp.ne.s32.totalorder %s4542_s22, %s4538_s21 }
   0xc   : > { %s4638_s29 = scalar_select %p66_p0, %s4546_s23, %s68_s28  }
   0xd   : > { %p4640_p4 = por %p76_p2, %p75_p1  ;;  %p5206_p5 = scmp.eq.s32.totalorder %s4625_s25, 0 }
   0xe   : > { %5220 = sst [smem:[#allocation21_spill]] %s4638_s29  ;;  %p3374_p6 = scmp.ge.s32.totalorder %s4550_s24, 1 }
   0xf   : > { %p186_p7 = scmp.lt.s32.totalorder %s4550_s24, 3  ;;  %p4649_p8 = por %p5206_p5, %p81_p3 }
  0x10   : > { %s4552_s9 = smov [#allocation4]   ;;  %p3831_p13 = scmp.lt.s32.totalorder %s4550_s24, 2 }
  0x11   : > { %s5222_s7 = scalar_select %p4649_p8, 1, 0 }
  0x12   : > { %p4654_p10 = pnand %p3374_p6, %p186_p7  ;;  %s198_s10 = sshll.u32 %s4552_s9, 4  ;;  %s199_s10 = int_to_ptr.vmem [resolvable:$true] %s198_s10 }
  0x13   : > { %s236_s12 = sand.u32 1, %s4550_s24   ;;  %p4670_p0 = pnand %p3831_p13, %p4640_p4 }
  0x14   : > { %s5223_s8 = scalar_select %p4654_p10, 1, 0 }
  0x15   : > { %p3808_p11 = pneg %p4654_p10  ;;  %s4325_s14 = scalar_lea.vmem %s199_s10, 128 }
  0x16   : > { %p4326_p2 = scmp.ne.s32.totalorder %s199_s10, %s4325_s14  ;;  %p4333_p7 = scmp.lt.s32.totalorder %s199_s10, %s199_s10 }
  0x17   : > { %p4662_p12 = pnand %p3808_p11, %p5206_p5  ;;  %p4334_p11 = scmp.lt.s32.totalorder %s4325_s14, %s4325_s14 }
  0x19   : > { %s5224_s11 = scalar_select %p4662_p12, 1, 0 }
  0x1a   : > { %p5209_p1 = pneg %p4662_p12  ;;  %p4335_p9 = por %p4334_p11, %p4333_p7 }
  0x1c   : > { %p4328_p3 = pnand %p4326_p2, %p5209_p1 }
  0x1e   : > { %p4329_p6 = pneg %p4328_p3 }
  0x20   : > { %p4336_p5 = pnand %p4335_p9, %p4329_p6 }
  0x22   : > { %4339 = shalt.err (!%p4336_p5)
}
  0x23   : > { %s4553_s15 = smov 64   ;;  %s4554_s16 = smov 4  }
  0x24   : > { %s5226_s0 = sld [smem:[#allocation22_spill]]  ;;  %s238_s19 = sand.u32 1, %s4546_s23  }
  0x25   : > { %s3706_s20 = smul.u32 192, %s4550_s24  ;;  %s5227_s2 = sld [smem:[#allocation23_spill]] }
  0x26   : > { %s4688_s21 = smul.u32 1152, %s238_s19  ;;  %s4555_s29 = smov [#allocation7]  }
  0x27   : > { %s211_s26 = sshll.u32 %s4555_s29, 4  ;;  %p4706_p5 = pneg %p4670_p0  ;;  %s4698_s26 = int_to_ptr.vmem [resolvable:$true] %s211_s26 }
  0x28   : > { %s240_s9 = scalar_lea.vmem [#allocation9], %s4688_s21 }
  0x29   : > { %s247_s14 = sshll.u32 %s240_s9, 4  ;;  %s4696_s14 = int_to_ptr.vmem [resolvable:$true] %s247_s14 }
  0x2a   : > { %3811 = dma.hbm_to_vmem [thread:$0]  (!%p4662_p12), %s5226_s0, 128, %s199_s10, [#allocation5], %s4553_s15, %s4553_s15, %s4554_s16  }
  0x2b   : > { %s4693_s30 = scalar_lea.hbm %s5227_s2, %s3706_s20  ;;  %s4700_s10 = scalar_lea.sflag [#allocation5], %s236_s12 }
  0x2c   : > { %s4340_s15 = scalar_lea.hbm %s4693_s30, 18432  ;;  %s4345_s29 = scalar_lea.hbm %s5227_s2, 36864 }
  0x2d   : > { %p4341_p4 = scmp.ne.s32.totalorder %s4693_s30, %s4340_s15  ;;  %p4346_p2 = scmp.lt.s32.totalorder %s4693_s30, %s5227_s2 }
  0x2e   : > { %p4347_p3 = scmp.lt.s32.totalorder %s4345_s29, %s4340_s15 }
  0x2f   : > { %p4343_p9 = pnand %p4706_p5, %p4341_p4 }
  0x30   : > { %p4348_p6 = por %p4347_p3, %p4346_p2 }
  0x31   : > { %p4344_p13 = pneg %p4343_p9 }
  0x33   : > { %p4349_p7 = pnand %p4348_p6, %p4344_p13 }
  0x35   : > { %4352 = shalt.err (!%p4349_p7)
}
  0x36   : > { %s4353_s12 = scalar_lea.vmem %s4696_s14, 18432  ;;  %s4556_s28 = smov [#allocation9]  }
  0x37   : > { %p4354_p11 = scmp.ne.s32.totalorder %s4696_s14, %s4353_s12  ;;  %s4358_s9 = sshll.u32 %s4556_s28, 4  ;;  %s4359_s9 = int_to_ptr.vmem [resolvable:$false] %s4358_s9 }
  0x38   : > { %s4360_s17 = scalar_lea.vmem %s4359_s9, 36864  ;;  %p4361_p1 = scmp.lt.s32.totalorder %s4696_s14, %s4359_s9 }
  0x39   : > { %p4356_p4 = pnand %p4354_p11, %p4706_p5  ;;  %p4362_p8 = scmp.lt.s32.totalorder %s4360_s17, %s4353_s12 }
  0x3b   : > { %p4357_p9 = pneg %p4356_p4  ;;  %p4363_p10 = por %p4362_p8, %p4361_p1 }
  0x3d   : > { %p4364_p12 = pnand %p4363_p10, %p4357_p9 }
  0x3f   : > { %4367 = shalt.err (!%p4364_p12)
}
  0x40   : > { %s4557_s15 = smov 384   ;;  %s4558_s18 = smov 192  }
  0x41   : > { %s4559_s29 = smov 12   ;;  %s3781_s20 = smul.u32 3, %s238_s19 }
  0x42   : > { %3821 = dma.hbm_to_vmem [thread:$0]  (!%p4670_p0), %s4693_s30, 18432, %s4696_s14, %s4700_s10, %s4557_s15, %s4558_s18, %s4559_s29  }
  0x43   : > { %s4379_s27 = scalar_lea.vmem %s4698_s26, 768  ;;  %p5229_p10 = scmp.ne.s32.totalorder %s5224_s11, 0 }
  0x44   : > { %p4380_p8 = scmp.ne.s32.totalorder %s4698_s26, %s4379_s27  ;;  %p4387_p2 = scmp.lt.s32.totalorder %s4698_s26, %s4698_s26 }
  0x45   : > { %p5230_p12 = pneg %p5229_p10  ;;  %p4388_p3 = scmp.lt.s32.totalorder %s4379_s27, %s4379_s27 }
  0x47   : > { %p4382_p1 = pnand %p4380_p8, %p5230_p12  ;;  %p4389_p6 = por %p4388_p3, %p4387_p2 }
  0x49   : > { %p4383_p13 = pneg %p4382_p1 }
  0x4b   : > { %p4390_p7 = pnand %p4389_p6, %p4383_p13 }
  0x4d   : > { %4393 = shalt.err (!%p4390_p7)
}
  0x4e   : > { %s4560_s12 = smov 24   ;;  %s3707_s14 = smul.u32 48, %s4550_s24 }
  0x4f   : > { %3814 = dma.hbm_to_vmem [thread:$0]  (!%p5229_p10), %s5200_s1, 768, %s4698_s26, [#allocation8], %s4557_s15, %s4557_s15, %s4560_s12  }
  0x50   : > { %s261_s28 = scalar_lea.vmem [#allocation10], %s3781_s20  ;;  %s267_s29 = scalar_lea.hbm %s5202_s3, %s3707_s14 }
  0x51   : > { %s269_s9 = sshll.u32 %s261_s28, 4  ;;  %s4394_s27 = scalar_lea.hbm %s267_s29, 48  ;;  %s270_s9 = int_to_ptr.vmem [resolvable:$true] %s269_s9 }
  0x52   : > { %p4395_p11 = scmp.ne.s32.totalorder %s267_s29, %s4394_s27  ;;  %s4399_s19 = scalar_lea.hbm %s5202_s3, 96 }
  0x53   : > { %p4400_p8 = scmp.lt.s32.totalorder %s267_s29, %s5202_s3  ;;  %p4401_p12 = scmp.lt.s32.totalorder %s4399_s19, %s4394_s27 }
  0x54   : > { %p4397_p4 = pnand %p4395_p11, %p4706_p5 }
  0x55   : > { %p4402_p1 = por %p4401_p12, %p4400_p8 }
  0x56   : > { %p4398_p9 = pneg %p4397_p4 }
  0x58   : > { %p4403_p13 = pnand %p4402_p1, %p4398_p9 }
  0x5a   : > { %4406 = shalt.err (!%p4403_p13)
}
  0x5b   : > { %s4407_s26 = scalar_lea.vmem %s270_s9, 48  ;;  %s4561_s20 = smov [#allocation10]  }
  0x5c   : > { %p4408_p2 = scmp.ne.s32.totalorder %s270_s9, %s4407_s26  ;;  %s4412_s14 = sshll.u32 %s4561_s20, 4  ;;  %s4413_s14 = int_to_ptr.vmem [resolvable:$false] %s4412_s14 }
  0x5d   : > { %s4414_s28 = scalar_lea.vmem %s4413_s14, 96  ;;  %p4415_p7 = scmp.lt.s32.totalorder %s270_s9, %s4413_s14 }
  0x5e   : > { %p4410_p3 = pnand %p4408_p2, %p4706_p5  ;;  %p4416_p11 = scmp.lt.s32.totalorder %s4414_s28, %s4407_s26 }
  0x60   : > { %p4411_p6 = pneg %p4410_p3  ;;  %p4417_p4 = por %p4416_p11, %p4415_p7 }
  0x62   : > { %p4418_p10 = pnand %p4417_p4, %p4411_p6 }
  0x64   : > { %4421 = shalt.err (!%p4418_p10)
}
  0x65   : > { %3824 = dma.hbm_to_vmem [thread:$0]  (!%p4670_p0), %s267_s29, 48, %s270_s9, %s4700_s10  }
  0x66   : > { %s4562_s0 = smov [#allocation12]   ;;  %s3832_s23 = smul.u32 18432, %s4550_s24 }
  0x67   : > { %s225_s2 = sshll.u32 %s4562_s0, 4  ;;  %p5231_p8 = scmp.ne.s32.totalorder %s5224_s11, 0  ;;  %s226_s2 = int_to_ptr.vmem [resolvable:$true] %s225_s2 }
  0x68   : > { %s4433_s17 = scalar_lea.vmem %s226_s2, 96  ;;  %p4441_p2 = scmp.lt.s32.totalorder %s226_s2, %s226_s2 }
  0x69   : > { %p4434_p9 = scmp.ne.s32.totalorder %s226_s2, %s4433_s17  ;;  %p5232_p12 = pneg %p5231_p8 }
  0x6a   : > { %p4442_p3 = scmp.lt.s32.totalorder %s4433_s17, %s4433_s17 }
  0x6b   : > { %p4436_p1 = pnand %p4434_p9, %p5232_p12 }
  0x6c   : > { %p4443_p6 = por %p4442_p3, %p4441_p2 }
  0x6d   : > { %p4437_p13 = pneg %p4436_p1 }
  0x6f   : > { %p4444_p10 = pnand %p4443_p6, %p4437_p13 }
  0x71   : > { %4447 = shalt.err (!%p4444_p10)
}
  0x72   : > { %3817 = dma.hbm_to_vmem [thread:$0]  (!%p5231_p8), %s5204_s5, 96, %s226_s2, [#allocation8]  }
  0x73   : > { %s4777_s29 = scalar_lea.hbm %s5203_s4, %s3832_s23  ;;  %s280_s19 = scalar_lea.vmem [#allocation11], %s4688_s21 }
  0x74   : > { %s288_s30 = sshll.u32 %s280_s19, 4  ;;  %s4448_s26 = scalar_lea.hbm %s4777_s29, 18432  ;;  %s289_s30 = int_to_ptr.vmem [resolvable:$true] %s288_s30 }
  0x75   : > { %p4449_p7 = scmp.ne.s32.totalorder %s4777_s29, %s4448_s26  ;;  %s4453_s14 = scalar_lea.hbm %s5203_s4, 36864 }
  0x76   : > { %p4454_p9 = scmp.lt.s32.totalorder %s4777_s29, %s5203_s4  ;;  %p4455_p8 = scmp.lt.s32.totalorder %s4453_s14, %s4448_s26 }
  0x77   : > { %p4451_p11 = pnand %p4449_p7, %p4706_p5 }
  0x78   : > { %p4456_p12 = por %p4455_p8, %p4454_p9 }
  0x79   : > { %p4452_p4 = pneg %p4451_p11 }
  0x7b   : > { %p4457_p1 = pnand %p4456_p12, %p4452_p4 }
  0x7d   : > { %4460 = shalt.err (!%p4457_p1)
}
  0x7e   : > { %s4461_s21 = scalar_lea.vmem %s289_s30, 18432  ;;  %s4563_s2 = smov [#allocation11]  }
  0x7f   : > { %p4462_p13 = scmp.ne.s32.totalorder %s289_s30, %s4461_s21  ;;  %s4466_s23 = sshll.u32 %s4563_s2, 4  ;;  %s4467_s23 = int_to_ptr.vmem [resolvable:$false] %s4466_s23 }
  0x80   : > { %s4468_s17 = scalar_lea.vmem %s4467_s23, 36864  ;;  %p4469_p6 = scmp.lt.s32.totalorder %s289_s30, %s4467_s23 }
  0x81   : > { %p4464_p2 = pnand %p4462_p13, %p4706_p5  ;;  %p4470_p10 = scmp.lt.s32.totalorder %s4468_s17, %s4461_s21 }
  0x83   : > { %p4465_p3 = pneg %p4464_p2  ;;  %p4471_p7 = por %p4470_p10, %p4469_p6 }
  0x85   : > { %p4472_p11 = pnand %p4471_p7, %p4465_p3 }
  0x87   : > { %4475 = shalt.err (!%p4472_p11)
}
  0x88   : > { %3827 = dma.hbm_to_vmem [thread:$0]  (!%p4670_p0), %s4777_s29, 18432, %s289_s30, %s4700_s10, %s4557_s15, %s4557_s15, %s4560_s12  }
  0x89   : > { %p5233_p5 = scmp.ne.s32.totalorder %s5223_s8, 0 }
  0x8a   : > { %p5234_p4 = scmp.eq.s32.totalorder (!%p5233_p5), %s4625_s25, 0 }
  0x8b   : > { %300 = sbr.rel (%p5233_p5) target bundleno = 1281 (0x501), region = 44 }
  0x90   : > { %4517 = dma.done.wait (%p5234_p4), [#allocation5], 128   ;;  %p5235_p9 = pmov %p5234_p4 }
  0x91   : > { %p5236_p8 = pmov %p5234_p4 }
  0x92   : > { %4519 = vsyncadd (%p5235_p9), [#allocation5], 4294967168 }
  0x93   : > { %4521 = dma.done.wait (%p5236_p8), [#allocation8], 768   ;;  %p5237_p12 = pmov %p5234_p4 }
  0x94   : > { %s310_s13 = sand.u32 1, %s4625_s25   ;;  %s312_s10 = sand.u32 1, %s4542_s22  }
  0x95   : > { %4523 = vsyncadd (%p5237_p12), [#allocation8], 4294966528  ;;  %s3784_s16 = smul.u32 1152, %s312_s10  ;;  %s311_s8 = scalar_lea.sflag [#allocation5], %s310_s13 }
  0x96   : > { %p5238_p0 = scmp.ne.s32.totalorder %s5222_s7, 0 }
  0x97   : > { %s4812_s15 = scalar_lea.vmem [#allocation9], %s3784_s16 }
  0x98   : > { %4525 = dma.done.wait (%p5238_p0), %s311_s8, 36912  }
  0x99   : > { %4527 = vsyncadd (%p5238_p0), %s311_s8, 4294930384  ;;  %s4818_s12 = smul.u32 3, %s312_s10  ;;  %s4821_s27 = scalar_lea.vmem [#allocation11], %s3784_s16 }
  0x9a   : > { %p5239_p1 = pmov %p5234_p4 }
  0x9b   : > { %s323_s18 = scalar_lea.vmem [#allocation10], %s4818_s12 }
  0x9c   : > { %4529 = dma.done.wait (%p5239_p1), [#allocation8], 96   ;;  %p5240_p13 = pmov %p5239_p1 }
  0x9d   : > { %p5241_p2 = scmp.ne.s32.totalorder %s4625_s25, 0 }
  0x9e   : > { %4531 = vsyncadd (%p5240_p13), [#allocation8], 4294967200 }
  0x9f   : > { %377 = sbr.rel (%p5241_p2) target bundleno = 380 (0x17c), region = 72 }
  0xa4   : > { %v3886_v0 = vld [vmem:[#allocation7 + $0x4] ss:$24 sps:$4 sm:$0xff]   ;;  %v3888_v1 = vld [vmem:[#allocation7] ss:$24 sps:$4 sm:$0xff]   ;;  %v4564_v2 = vmov 0   ;;  %vm421_vm0 = vcmask 130048  }
  0xa5   : > { %457 = vmatprep.mubr.bf16.mxu0 %v4564_v2  ;;  %500 = vmatprep.mubr.bf16.mxu1 %v4564_v2  ;;  %v3889_v3 = vld [vmem:[#allocation7 + $0xc] ss:$24 sps:$4 sm:$0xff]   ;;  %v3891_v4 = vld [vmem:[#allocation4] sm:$0xff]   ;;  %v3892_v5 = vld [vmem:[#allocation7 + $0x8] ss:$24 sps:$4 sm:$0xff]   ;;  %v4565_v8 = vmov 0.0  }
  0xa6   : > { %439 = vmatprep.subr.bf16.mxu0 %v3886_v0  ;;  %482 = vmatprep.subr.bf16.mxu1 %v3889_v3  ;;  %v3893_v6 = vld [vmem:[#allocation7 + $0x10] ss:$24 sps:$4 sm:$0xff]   ;;  %v3895_v7 = vld [vmem:[#allocation7 + $0x14] ss:$24 sps:$4 sm:$0xff]   ;;  %596 = vst [vmem:[#allocation3 + $0x40] sm:$0xff] %v4565_v8  ;;  %597 = vst [vmem:[#allocation3 + $0x8] sm:$0xff] %v4565_v8 }
  0xa7   : > { %440 = vmatpush1.bf16.msra.mxu0 %v3888_v1  ;;  %483 = vmatpush1.bf16.msra.mxu1 %v3892_v5  ;;  %598 = vst [vmem:[#allocation3 + $0x20] sm:$0xff] %v4565_v8  ;;  %599 = vst [vmem:[#allocation3 + $0x58] sm:$0xff] %v4565_v8 }
  0xa8   : > { %525 = vmatprep.subr.bf16.mxu0 %v3895_v7  ;;  %600 = vst [vmem:[#allocation3 + $0x28] sm:$0xff] %v4565_v8  ;;  %601 = vst [vmem:[#allocation3 + $0x30] sm:$0xff] %v4565_v8 }
  0xa9   : > { %602 = vst [vmem:[#allocation3 + $0x10] sm:$0xff] %v4565_v8  ;;  %603 = vst [vmem:[#allocation3 + $0x38] sm:$0xff] %v4565_v8 }
  0xaa   : > { %3394 = vmatmul.mubr.msk.bf16.vlgmr.msra.gmra.mxu0 %vm421_vm0, %v3891_v4  ;;  %3395 = vmatmul.mubr.msk.bf16.vlgmr.msra.gmra.mxu1 %vm421_vm0, %v3891_v4  ;;  %604 = vst [vmem:[#allocation3 + $0x48] sm:$0xff] %v4565_v8  ;;  %605 = vst [vmem:[#allocation3 + $0x50] sm:$0xff] %v4565_v8 }
  0xab   : > { %526 = vmatpush1.bf16.msra.mxu0 %v3893_v6  ;;  %543 = vmatprep.mubr.bf16.mxu0 %v4564_v2  ;;  %606 = vst [vmem:[#allocation3] sm:$0xff] %v4565_v8  ;;  %607 = vst [vmem:[#allocation3 + $0x18] sm:$0xff] %v4565_v8 }
  0xb2   : > { %3396 = vmatmul.mubr.msk.bf16.vlgmr.msra.gmra.mxu0 %vm421_vm0, %v3891_v4 }
 0x16a   : > { %v459_v9 = vpop.f32.mrf.mxu0  ;;  %v502_v11 = vpop.f32.mrf.mxu1 }
 0x16c   : > { %v461_v10 = vpop.f32.mrf.mxu0  ;;  %v504_v14 = vpop.f32.mrf.mxu1 }
 0x16d   : > { %v3708_v12 = vpack.c.bf16 %v461_v10, %v459_v9  ;;  %v3709_v15 = vpack.c.bf16 %v504_v14, %v502_v11 }
 0x16e   : > { %v463_v13 = vpop.f32.mrf.mxu0  ;;  %v506_v17 = vpop.f32.mrf.mxu1 }
 0x16f   : > { %590 = vst [vmem:[#allocation2 + $0x28] sm:$0xff] %v3708_v12  ;;  %591 = vst [vmem:[#allocation2 + $0x10] sm:$0xff] %v3709_v15 }
 0x170   : > { %v465_v16 = vpop.f32.mrf.mxu0  ;;  %v508_v20 = vpop.f32.mrf.mxu1 }
 0x171   : > { %v3711_v18 = vpack.c.bf16 %v465_v16, %v463_v13  ;;  %v3712_v21 = vpack.c.bf16 %v508_v20, %v506_v17 }
 0x172   : > { %v545_v19 = vpop.f32.mrf.mxu0 }
 0x173   : > { %593 = vst [vmem:[#allocation2] sm:$0xff] %v3711_v18  ;;  %594 = vst [vmem:[#allocation2 + $0x18] sm:$0xff] %v3712_v21 }
 0x174   : > { %v547_v22 = vpop.f32.mrf.mxu0 }
 0x175   : > { %v3710_v23 = vpack.c.bf16 %v547_v22, %v545_v19 }
 0x176   : > { %v549_v24 = vpop.f32.mrf.mxu0 }
 0x177   : > { %592 = vst [vmem:[#allocation2 + $0x8] sm:$0xff] %v3710_v23 }
 0x178   : > { %v551_v25 = vpop.f32.mrf.mxu0 }
 0x179   : > { %v3713_v26 = vpack.c.bf16 %v551_v25, %v549_v24 }
 0x17b   : > { %595 = vst [vmem:[#allocation2 + $0x20] sm:$0xff] %v3713_v26 }
 0x17c PF: > { %v3896_v27 = vld [vmem:[%s4812_s15 + $0xac] ss:$12 sps:$4 sm:$0xff]   ;;  %v3900_v29 = vld [vmem:[%s4812_s15 + $0xa8] ss:$12 sps:$4 sm:$0xff]   ;;  %v3906_v33 = vld [vmem:[%s4812_s15 + $0x90] ss:$12 sps:$4 sm:$0xff]  }
 0x17d   : > { %v3898_v28 = vld [vmem:[%s4812_s15 + $0x22c] ss:$12 sps:$4 sm:$0xff]   ;;  %1621 = vmatprep.subr.bf16.mxu0 %v3896_v27  ;;  %v3901_v30 = vld [vmem:[%s4812_s15 + $0x228] ss:$12 sps:$4 sm:$0xff]   ;;  %v3907_v34 = vld [vmem:[%s4812_s15 + $0x210] ss:$12 sps:$4 sm:$0xff]  }
 0x17e   : > { %1664 = vmatprep.subr.bf16.mxu1 %v3898_v28  ;;  %v3902_v31 = vld [vmem:[%s4812_s15 + $0x94] ss:$12 sps:$4 sm:$0xff]   ;;  %1622 = vmatpush1.bf16.msra.mxu0 %v3900_v29  ;;  %v3908_v35 = vld [vmem:[%s4812_s15 + $0x7c] ss:$12 sps:$4 sm:$0xff]   ;;  %v3912_v37 = vld [vmem:[%s4812_s15 + $0x78] ss:$12 sps:$4 sm:$0xff]  }
 0x17f   : > { %1665 = vmatpush1.bf16.msra.mxu1 %v3901_v30  ;;  %v3904_v32 = vld [vmem:[%s4812_s15 + $0x214] ss:$12 sps:$4 sm:$0xff]   ;;  %1623 = vmatprep.subr.bf16.mxu0 %v3902_v31  ;;  %v3910_v36 = vld [vmem:[%s4812_s15 + $0x1fc] ss:$12 sps:$4 sm:$0xff]   ;;  %v3913_v38 = vld [vmem:[%s4812_s15 + $0x1f8] ss:$12 sps:$4 sm:$0xff]  }
 0x180   : > { %1666 = vmatprep.subr.bf16.mxu1 %v3904_v32  ;;  %v3914_v39 = vld [vmem:[%s4812_s15 + $0x64] ss:$12 sps:$4 sm:$0xff]   ;;  %v3918_v41 = vld [vmem:[%s4812_s15 + $0x60] ss:$12 sps:$4 sm:$0xff]   ;;  %v3924_v45 = vld [vmem:[%s4812_s15 + $0x48] ss:$12 sps:$4 sm:$0xff]  }
 0x181   : > { %v3916_v40 = vld [vmem:[%s4812_s15 + $0x1e4] ss:$12 sps:$4 sm:$0xff]   ;;  %v3919_v42 = vld [vmem:[%s4812_s15 + $0x1e0] ss:$12 sps:$4 sm:$0xff]   ;;  %v3925_v46 = vld [vmem:[%s4812_s15 + $0x1c8] ss:$12 sps:$4 sm:$0xff]  }
 0x182   : > { %1624 = vmatpush1.bf16.msra.mxu0 %v3906_v33  ;;  %v3920_v43 = vld [vmem:[%s4812_s15 + $0x4c] ss:$12 sps:$4 sm:$0xff]   ;;  %v3926_v47 = vld [vmem:[%s4812_s15 + $0x34] ss:$12 sps:$4 sm:$0xff]   ;;  %v3930_v49 = vld [vmem:[%s4812_s15 + $0x30] ss:$12 sps:$4 sm:$0xff]  }
 0x183   : > { %1667 = vmatpush1.bf16.msra.mxu1 %v3907_v34  ;;  %1625 = vmatprep.subr.bf16.mxu0 %v3908_v35  ;;  %v3922_v44 = vld [vmem:[%s4812_s15 + $0x1cc] ss:$12 sps:$4 sm:$0xff]   ;;  %v3928_v48 = vld [vmem:[%s4812_s15 + $0x1b4] ss:$12 sps:$4 sm:$0xff]   ;;  %v3931_v50 = vld [vmem:[%s4812_s15 + $0x1b0] ss:$12 sps:$4 sm:$0xff]  }
 0x184   : > { %1668 = vmatprep.subr.bf16.mxu1 %v3910_v36  ;;  %v3932_v51 = vld [vmem:[%s4812_s15 + $0x1c] ss:$12 sps:$4 sm:$0xff]   ;;  %v3936_v53 = vld [vmem:[%s4812_s15 + $0x18] ss:$12 sps:$4 sm:$0xff]   ;;  %v3942_v57 = vld [vmem:[%s4812_s15] ss:$12 sps:$4 sm:$0xff]  }
 0x185   : > { %v3934_v52 = vld [vmem:[%s4812_s15 + $0x19c] ss:$12 sps:$4 sm:$0xff]   ;;  %v3937_v54 = vld [vmem:[%s4812_s15 + $0x198] ss:$12 sps:$4 sm:$0xff]   ;;  %v3943_v58 = vld [vmem:[%s4812_s15 + $0x180] ss:$12 sps:$4 sm:$0xff]  }
 0x186   : > { %1626 = vmatpush1.bf16.msra.mxu0 %v3912_v37  ;;  %v3938_v55 = vld [vmem:[%s4812_s15 + $0x4] ss:$12 sps:$4 sm:$0xff]   ;;  %v3944_v59 = vld [vmem:[%s4812_s15 + $0x16c] ss:$12 sps:$4 sm:$0xff]   ;;  %v3948_v61 = vld [vmem:[%s4812_s15 + $0x168] ss:$12 sps:$4 sm:$0xff]  }
 0x187   : > { %1669 = vmatpush1.bf16.msra.mxu1 %v3913_v38  ;;  %1627 = vmatprep.subr.bf16.mxu0 %v3914_v39  ;;  %v3940_v56 = vld [vmem:[%s4812_s15 + $0x184] ss:$12 sps:$4 sm:$0xff]   ;;  %v3946_v60 = vld [vmem:[%s4812_s15 + $0x2ec] ss:$12 sps:$4 sm:$0xff]   ;;  %v3949_v62 = vld [vmem:[%s4812_s15 + $0x2e8] ss:$12 sps:$4 sm:$0xff]  }
 0x188   : > { %1670 = vmatprep.subr.bf16.mxu1 %v3916_v40  ;;  %v3950_v63 = vld [vmem:[%s4812_s15 + $0x154] ss:$12 sps:$4 sm:$0xff]   ;;  %v3954_v1 = vld [vmem:[%s4812_s15 + $0x150] ss:$12 sps:$4 sm:$0xff]   ;;  %v3960_v5 = vld [vmem:[%s4812_s15 + $0x138] ss:$12 sps:$4 sm:$0xff]  }
 0x189   : > { %v3952_v0 = vld [vmem:[%s4812_s15 + $0x2d4] ss:$12 sps:$4 sm:$0xff]   ;;  %v3955_v2 = vld [vmem:[%s4812_s15 + $0x2d0] ss:$12 sps:$4 sm:$0xff]   ;;  %v3961_v6 = vld [vmem:[%s4812_s15 + $0x2b8] ss:$12 sps:$4 sm:$0xff]  }
 0x18a   : > { %1628 = vmatpush1.bf16.msra.mxu0 %v3918_v41  ;;  %v3956_v3 = vld [vmem:[%s4812_s15 + $0x13c] ss:$12 sps:$4 sm:$0xff]   ;;  %v3962_v7 = vld [vmem:[%s4812_s15 + $0x124] ss:$12 sps:$4 sm:$0xff]   ;;  %v3966_v9 = vld [vmem:[%s4812_s15 + $0x120] ss:$12 sps:$4 sm:$0xff]  }
 0x18b   : > { %1671 = vmatpush1.bf16.msra.mxu1 %v3919_v42  ;;  %1629 = vmatprep.subr.bf16.mxu0 %v3920_v43  ;;  %v3958_v4 = vld [vmem:[%s4812_s15 + $0x2bc] ss:$12 sps:$4 sm:$0xff]   ;;  %v3964_v8 = vld [vmem:[%s4812_s15 + $0x2a4] ss:$12 sps:$4 sm:$0xff]   ;;  %v3967_v10 = vld [vmem:[%s4812_s15 + $0x2a0] ss:$12 sps:$4 sm:$0xff]  }
 0x18c   : > { %1672 = vmatprep.subr.bf16.mxu1 %v3922_v44  ;;  %v3968_v11 = vld [vmem:[%s4812_s15 + $0x10c] ss:$12 sps:$4 sm:$0xff]   ;;  %v3994_v12 = vld [vmem:[#allocation2 + $0x2c] ss:$-40 sps:$4 sm:$0xff]   ;;  %v3972_v15 = vld [vmem:[%s4812_s15 + $0x108] ss:$12 sps:$4 sm:$0xff]  }
 0x18d   : > { %v3970_v13 = vld [vmem:[%s4812_s15 + $0x28c] ss:$12 sps:$4 sm:$0xff]   ;;  %1653 = vmatprep.mubr.bf16.mxu0 %v3994_v12  ;;  %v3973_v16 = vld [vmem:[%s4812_s15 + $0x288] ss:$12 sps:$4 sm:$0xff]   ;;  %v3978_v19 = vld [vmem:[%s4812_s15 + $0xf0] ss:$12 sps:$4 sm:$0xff]  }
 0x18e   : > { %1630 = vmatpush1.bf16.msra.mxu0 %v3924_v45  ;;  %v4879_v14 = vld [vmem:[#allocation2 + $0x14] ss:$8 sps:$4 sm:$0xff]   ;;  %v3979_v20 = vld [vmem:[%s4812_s15 + $0x270] ss:$12 sps:$4 sm:$0xff]   ;;  %v3984_v23 = vld [vmem:[%s4812_s15 + $0xd8] ss:$12 sps:$4 sm:$0xff]  }
 0x18f   : > { %1673 = vmatpush1.bf16.msra.mxu1 %v3925_v46  ;;  %1631 = vmatprep.subr.bf16.mxu0 %v3926_v47  ;;  %v3974_v17 = vld [vmem:[%s4812_s15 + $0xf4] ss:$12 sps:$4 sm:$0xff]   ;;  %v3980_v21 = vld [vmem:[%s4812_s15 + $0xdc] ss:$12 sps:$4 sm:$0xff]   ;;  %v3985_v24 = vld [vmem:[%s4812_s15 + $0x258] ss:$12 sps:$4 sm:$0xff]  }
 0x190   : > { %1674 = vmatprep.subr.bf16.mxu1 %v3928_v48  ;;  %1696 = vmatprep.mubr.bf16.mxu1 %v4879_v14  ;;  %v3976_v18 = vld [vmem:[%s4812_s15 + $0x274] ss:$12 sps:$4 sm:$0xff]   ;;  %v3982_v22 = vld [vmem:[%s4812_s15 + $0x25c] ss:$12 sps:$4 sm:$0xff]   ;;  %v3986_v25 = vld [vmem:[%s4812_s15 + $0xc4] ss:$12 sps:$4 sm:$0xff]  }
 0x191   : > { %v3988_v26 = vld [vmem:[%s4812_s15 + $0x244] ss:$12 sps:$4 sm:$0xff]   ;;  %v3990_v27 = vld [vmem:[%s4812_s15 + $0xc0] ss:$12 sps:$4 sm:$0xff]   ;;  %v3998_v33 = vld [vmem:[%s4812_s15 + $0x3a8] ss:$12 sps:$4 sm:$0xff]  }
 0x192   : > { %1632 = vmatpush1.bf16.msra.mxu0 %v3930_v49  ;;  %v3991_v28 = vld [vmem:[%s4812_s15 + $0x240] ss:$12 sps:$4 sm:$0xff]   ;;  %v4899_v31 = vld [vmem:[#allocation2 + $0x10] ss:$8 sps:$4 sm:$0xff]   ;;  %v4006_v36 = vld [vmem:[%s4812_s15 + $0x158] ss:$12 sps:$4 sm:$0xff]  }
 0x193   : > { %1675 = vmatpush1.bf16.msra.mxu1 %v3931_v50  ;;  %1633 = vmatprep.subr.bf16.mxu0 %v3932_v51  ;;  %v4000_v29 = vld [vmem:[%s4812_s15 + $0x3ac] ss:$12 sps:$4 sm:$0xff]   ;;  %v4001_v32 = vld [vmem:[%s4812_s15 + $0x170] ss:$12 sps:$4 sm:$0xff]   ;;  %v4005_v35 = vld [vmem:[%s4812_s15 + $0x394] ss:$12 sps:$4 sm:$0xff]  }
 0x194   : > { %1676 = vmatprep.subr.bf16.mxu1 %v3934_v52  ;;  %v4897_v30 = vld [vmem:[#allocation2 + $0x28] ss:$-40 sps:$4 sm:$0xff]   ;;  %v4002_v34 = vld [vmem:[%s4812_s15 + $0xb0] ss:$12 sps:$4 sm:$0xff]   ;;  %v4016_v44 = vld [vmem:[%s4812_s15 + $0x128] ss:$12 sps:$4 sm:$0xff]  }
 0x195   : > { %v4003_v37 = vld [vmem:[%s4812_s15 + $0x390] ss:$12 sps:$4 sm:$0xff]   ;;  %v4007_v38 = vld [vmem:[%s4812_s15 + $0x98] ss:$12 sps:$4 sm:$0xff]   ;;  %v4011_v40 = vld [vmem:[%s4812_s15 + $0x140] ss:$12 sps:$4 sm:$0xff]  }
 0x196   : > { %1634 = vmatpush1.bf16.msra.mxu0 %v3936_v53  ;;  %v4010_v39 = vld [vmem:[%s4812_s15 + $0x37c] ss:$12 sps:$4 sm:$0xff]   ;;  %v4008_v41 = vld [vmem:[%s4812_s15 + $0x378] ss:$12 sps:$4 sm:$0xff]   ;;  %v4012_v42 = vld [vmem:[%s4812_s15 + $0x80] ss:$12 sps:$4 sm:$0xff]  }
 0x197   : > { %1677 = vmatpush1.bf16.msra.mxu1 %v3937_v54  ;;  %1635 = vmatprep.subr.bf16.mxu0 %v3938_v55  ;;  %v4015_v43 = vld [vmem:[%s4812_s15 + $0x364] ss:$12 sps:$4 sm:$0xff]   ;;  %v4013_v45 = vld [vmem:[%s4812_s15 + $0x360] ss:$12 sps:$4 sm:$0xff]   ;;  %v4017_v46 = vld [vmem:[%s4812_s15 + $0x68] ss:$12 sps:$4 sm:$0xff]  }
 0x198   : > { %1678 = vmatprep.subr.bf16.mxu1 %v3940_v56  ;;  %v4020_v47 = vld [vmem:[%s4812_s15 + $0x34c] ss:$12 sps:$4 sm:$0xff]   ;;  %v4021_v48 = vld [vmem:[%s4812_s15 + $0x110] ss:$12 sps:$4 sm:$0xff]   ;;  %v4018_v49 = vld [vmem:[%s4812_s15 + $0x348] ss:$12 sps:$4 sm:$0xff]  }
 0x199   : > { %v4022_v50 = vld [vmem:[%s4812_s15 + $0x50] ss:$12 sps:$4 sm:$0xff]   ;;  %v4025_v51 = vld [vmem:[%s4812_s15 + $0x334] ss:$12 sps:$4 sm:$0xff]   ;;  %v4026_v52 = vld [vmem:[%s4812_s15 + $0xf8] ss:$12 sps:$4 sm:$0xff]  }
 0x19a   : > { %1636 = vmatpush1.bf16.msra.mxu0 %v3942_v57  ;;  %v4023_v53 = vld [vmem:[%s4812_s15 + $0x330] ss:$12 sps:$4 sm:$0xff]   ;;  %v4027_v54 = vld [vmem:[%s4812_s15 + $0x38] ss:$12 sps:$4 sm:$0xff]   ;;  %v4031_v56 = vld [vmem:[%s4812_s15 + $0xe0] ss:$12 sps:$4 sm:$0xff]  }
 0x19b   : > { %1679 = vmatpush1.bf16.msra.mxu1 %v3943_v58  ;;  %1637 = vmatprep.subr.bf16.mxu0 %v3944_v59  ;;  %v4030_v55 = vld [vmem:[%s4812_s15 + $0x31c] ss:$12 sps:$4 sm:$0xff]   ;;  %v4028_v57 = vld [vmem:[%s4812_s15 + $0x318] ss:$12 sps:$4 sm:$0xff]   ;;  %v4032_v58 = vld [vmem:[%s4812_s15 + $0x20] ss:$12 sps:$4 sm:$0xff]  }
 0x19c   : > { %1680 = vmatprep.subr.bf16.mxu1 %v3946_v60  ;;  %v4035_v59 = vld [vmem:[%s4812_s15 + $0x304] ss:$12 sps:$4 sm:$0xff]   ;;  %v4036_v60 = vld [vmem:[%s4812_s15 + $0xc8] ss:$12 sps:$4 sm:$0xff]   ;;  %p3697_p3 = scmp.ne.s32.totalorder %s4625_s25, 1 }
 0x19e   : > { %1638 = vmatpush2.bf16.msra.mxu0 %v3948_v61  ;;  %v4033_v61 = vld [vmem:[%s4812_s15 + $0x300] ss:$12 sps:$4 sm:$0xff]  }
 0x19f   : > { %1681 = vmatpush2.bf16.msra.mxu1 %v3949_v62  ;;  %1639 = vmatprep.subr.bf16.mxu0 %v3950_v63  ;;  %v4037_v62 = vld [vmem:[%s4812_s15 + $0x8] ss:$12 sps:$4 sm:$0xff]   ;;  %v4040_v63 = vld [vmem:[%s4812_s15 + $0x46c] ss:$12 sps:$4 sm:$0xff]  }
 0x1a0   : > { %1682 = vmatprep.subr.bf16.mxu1 %v3952_v0  ;;  %v4041_v0 = vld [vmem:[%s4812_s15 + $0x2f0] ss:$12 sps:$4 sm:$0xff]  }
 0x1a2   : > { %1640 = vmatpush2.bf16.msra.mxu0 %v3954_v1  ;;  %v4038_v1 = vld [vmem:[%s4812_s15 + $0x468] ss:$12 sps:$4 sm:$0xff]  }
 0x1a3   : > { %1683 = vmatpush2.bf16.msra.mxu1 %v3955_v2  ;;  %1641 = vmatprep.subr.bf16.mxu0 %v3956_v3  ;;  %v4042_v2 = vld [vmem:[%s4812_s15 + $0x230] ss:$12 sps:$4 sm:$0xff]   ;;  %v4045_v3 = vld [vmem:[%s4812_s15 + $0x454] ss:$12 sps:$4 sm:$0xff]  }
 0x1a4   : > { %1684 = vmatprep.subr.bf16.mxu1 %v3958_v4  ;;  %v4046_v4 = vld [vmem:[%s4812_s15 + $0x2d8] ss:$12 sps:$4 sm:$0xff]  }
 0x1a6   : > { %1642 = vmatpush2.bf16.msra.mxu0 %v3960_v5  ;;  %v4043_v5 = vld [vmem:[%s4812_s15 + $0x450] ss:$12 sps:$4 sm:$0xff]  }
 0x1a7   : > { %1685 = vmatpush2.bf16.msra.mxu1 %v3961_v6  ;;  %1643 = vmatprep.subr.bf16.mxu0 %v3962_v7  ;;  %v4047_v6 = vld [vmem:[%s4812_s15 + $0x218] ss:$12 sps:$4 sm:$0xff]  }
 0x1a8   : > { %1686 = vmatprep.subr.bf16.mxu1 %v3964_v8  ;;  %v4943_v7 = vld [vmem:[#allocation2 + $0xc] ss:$24 sps:$4 sm:$0xff]  }
 0x1a9   : > { %v4050_v8 = vld [vmem:[%s4812_s15 + $0x43c] ss:$12 sps:$4 sm:$0xff]  }
 0x1aa   : > { %1644 = vmatpush2.bf16.msra.mxu0 %v3966_v9  ;;  %v4051_v9 = vld [vmem:[%s4812_s15 + $0x2c0] ss:$12 sps:$4 sm:$0xff]  }
 0x1ab   : > { %1687 = vmatpush2.bf16.msra.mxu1 %v3967_v10  ;;  %1645 = vmatprep.subr.bf16.mxu0 %v3968_v11  ;;  %v4048_v10 = vld [vmem:[%s4812_s15 + $0x438] ss:$12 sps:$4 sm:$0xff]   ;;  %v4052_v11 = vld [vmem:[%s4812_s15 + $0x200] ss:$12 sps:$4 sm:$0xff]  }
 0x1ac   : > { %1688 = vmatprep.subr.bf16.mxu1 %v3970_v13  ;;  %v4056_v13 = vld [vmem:[%s4812_s15 + $0x2a8] ss:$12 sps:$4 sm:$0xff]  }
 0x1ae   : > { %1646 = vmatpush2.bf16.msra.mxu0 %v3972_v15  ;;  %v4053_v15 = vld [vmem:[%s4812_s15 + $0x420] ss:$12 sps:$4 sm:$0xff]  }
 0x1af   : > { %1689 = vmatpush2.bf16.msra.mxu1 %v3973_v16  ;;  %1647 = vmatprep.subr.bf16.mxu0 %v3974_v17  ;;  %v4057_v16 = vld [vmem:[%s4812_s15 + $0x1e8] ss:$12 sps:$4 sm:$0xff]   ;;  %v4060_v17 = vld [vmem:[%s4812_s15 + $0x40c] ss:$12 sps:$4 sm:$0xff]  }
 0x1b0   : > { %1690 = vmatprep.subr.bf16.mxu1 %v3976_v18  ;;  %v4058_v18 = vld [vmem:[%s4812_s15 + $0x408] ss:$12 sps:$4 sm:$0xff]  }
 0x1b2   : > { %1648 = vmatpush2.bf16.msra.mxu0 %v3978_v19  ;;  %v4062_v19 = vld [vmem:[%s4812_s15 + $0x1d0] ss:$12 sps:$4 sm:$0xff]  }
 0x1b3   : > { %1691 = vmatpush2.bf16.msra.mxu1 %v3979_v20  ;;  %1649 = vmatprep.subr.bf16.mxu0 %v3980_v21  ;;  %v4065_v20 = vld [vmem:[%s4812_s15 + $0x3f4] ss:$12 sps:$4 sm:$0xff]   ;;  %v4066_v21 = vld [vmem:[%s4812_s15 + $0x278] ss:$12 sps:$4 sm:$0xff]  }
 0x1b4   : > { %1692 = vmatprep.subr.bf16.mxu1 %v3982_v22  ;;  %v4063_v22 = vld [vmem:[%s4812_s15 + $0x3f0] ss:$12 sps:$4 sm:$0xff]  }
 0x1b6   : > { %1650 = vmatpush2.bf16.msra.mxu0 %v3984_v23  ;;  %v4067_v23 = vld [vmem:[%s4812_s15 + $0x1b8] ss:$12 sps:$4 sm:$0xff]  }
 0x1b7   : > { %1693 = vmatpush2.bf16.msra.mxu1 %v3985_v24  ;;  %1651 = vmatprep.subr.bf16.mxu0 %v3986_v25  ;;  %v4070_v24 = vld [vmem:[%s4812_s15 + $0x3dc] ss:$12 sps:$4 sm:$0xff]   ;;  %v4071_v25 = vld [vmem:[%s4812_s15 + $0x260] ss:$12 sps:$4 sm:$0xff]  }
 0x1b8   : > { %1694 = vmatprep.subr.bf16.mxu1 %v3988_v26  ;;  %v4068_v26 = vld [vmem:[%s4812_s15 + $0x3d8] ss:$12 sps:$4 sm:$0xff]  }
 0x1ba   : > { %1652 = vmatpush2.bf16.msra.mxu0 %v3990_v27  ;;  %v4072_v27 = vld [vmem:[%s4812_s15 + $0x1a0] ss:$12 sps:$4 sm:$0xff]  }
 0x1bb   : > { %1695 = vmatpush2.bf16.msra.mxu1 %v3991_v28  ;;  %1707 = vmatprep.subr.bf16.mxu0 %v4000_v29  ;;  %v4075_v28 = vld [vmem:[%s4812_s15 + $0x3c4] ss:$12 sps:$4 sm:$0xff]   ;;  %v4076_v29 = vld [vmem:[%s4812_s15 + $0x248] ss:$12 sps:$4 sm:$0xff]  }
 0x1bc   : > { %3714 = vmatprep.subr.bf16.mxu1 %v4001_v32  ;;  %v4077_v32 = vld [vmem:[%s4812_s15 + $0x188] ss:$12 sps:$4 sm:$0xff]  }
 0x1bd   : > { %1654 = vmatmul.mubr.bf16.vlgmr.msra.gmra.mxu0 %v4897_v30 }
 0x1be   : > { %1697 = vmatmul.mubr.bf16.vlgmr.msra.gmra.mxu1 %v4899_v31  ;;  %1708 = vmatpush1.bf16.msra.mxu0 %v3998_v33  ;;  %v4081_v33 = vld [vmem:[%s4812_s15 + $0x470] ss:$12 sps:$4 sm:$0xff]  }
 0x1bf   : > { %3715 = vmatpush3.bf16.msra.mxu1 %v4002_v34  ;;  %1709 = vmatprep.subr.bf16.mxu0 %v4005_v35  ;;  %v4078_v34 = vld [vmem:[#allocation2 + $0x8] ss:$24 sps:$4 sm:$0xff]   ;;  %v4082_v35 = vld [vmem:[%s4812_s15 + $0x3b0] ss:$12 sps:$4 sm:$0xff]  }
 0x1c0   : > { %3716 = vmatprep.subr.bf16.mxu1 %v4006_v36  ;;  %1782 = vmatprep.mubr.bf16.mxu1 %v3994_v12  ;;  %v4055_v12 = vld [vmem:[%s4812_s15 + $0x424] ss:$12 sps:$4 sm:$0xff]  }
 0x1c1   : > { %1739 = vmatprep.mubr.bf16.mxu0 %v4943_v7  ;;  %v4083_v36 = vld [vmem:[%s4812_s15 + $0x458] ss:$12 sps:$4 sm:$0xff]  }
 0x1c2   : > { %1710 = vmatpush1.bf16.msra.mxu0 %v4003_v37  ;;  %v4084_v37 = vld [vmem:[%s4812_s15 + $0x398] ss:$12 sps:$4 sm:$0xff]  }
 0x1c3   : > { %3717 = vmatpush3.bf16.msra.mxu1 %v4007_v38  ;;  %1711 = vmatprep.subr.bf16.mxu0 %v4010_v39  ;;  %v4085_v38 = vld [vmem:[%s4812_s15 + $0x440] ss:$12 sps:$4 sm:$0xff]  }
 0x1c4   : > { %3718 = vmatprep.subr.bf16.mxu1 %v4011_v40  ;;  %v4086_v39 = vld [vmem:[%s4812_s15 + $0x380] ss:$12 sps:$4 sm:$0xff]   ;;  %v4087_v40 = vld [vmem:[%s4812_s15 + $0x428] ss:$12 sps:$4 sm:$0xff]  }
 0x1c6   : > { %1712 = vmatpush1.bf16.msra.mxu0 %v4008_v41  ;;  %v4088_v41 = vld [vmem:[%s4812_s15 + $0x368] ss:$12 sps:$4 sm:$0xff]  }
 0x1c7   : > { %3719 = vmatpush3.bf16.msra.mxu1 %v4012_v42  ;;  %1713 = vmatprep.subr.bf16.mxu0 %v4015_v43  ;;  %v4097_v42 = vld [vmem:[%s4821_s27 + $0x150] ss:$24 sps:$4 sm:$0xff]  }
 0x1c8   : > { %3720 = vmatprep.subr.bf16.mxu1 %v4016_v44  ;;  %v4089_v43 = vld [vmem:[%s4812_s15 + $0x410] ss:$12 sps:$4 sm:$0xff]   ;;  %v4102_v44 = vld [vmem:[%s4821_s27 + $0x124] ss:$24 sps:$4 sm:$0xff]  }
 0x1ca   : > { %1714 = vmatpush1.bf16.msra.mxu0 %v4013_v45  ;;  %v4100_v45 = vld [vmem:[%s4821_s27 + $0x120] ss:$24 sps:$4 sm:$0xff]  }
 0x1cb   : > { %3721 = vmatpush3.bf16.msra.mxu1 %v4017_v46  ;;  %1715 = vmatprep.subr.bf16.mxu0 %v4020_v47  ;;  %v4090_v46 = vld [vmem:[%s4812_s15 + $0x350] ss:$12 sps:$4 sm:$0xff]  }
 0x1cc   : > { %3722 = vmatprep.subr.bf16.mxu1 %v4021_v48  ;;  %v4105_v47 = vld [vmem:[%s4821_s27 + $0xf4] ss:$24 sps:$4 sm:$0xff]  }
 0x1cd   : > { %v4091_v48 = vld [vmem:[%s4812_s15 + $0x3f8] ss:$12 sps:$4 sm:$0xff]  }
 0x1ce   : > { %1716 = vmatpush1.bf16.msra.mxu0 %v4018_v49  ;;  %v4092_v49 = vld [vmem:[%s4812_s15 + $0x338] ss:$12 sps:$4 sm:$0xff]  }
 0x1cf   : > { %3723 = vmatpush3.bf16.msra.mxu1 %v4022_v50  ;;  %1717 = vmatprep.subr.bf16.mxu0 %v4025_v51  ;;  %v4103_v50 = vld [vmem:[%s4821_s27 + $0xf0] ss:$24 sps:$4 sm:$0xff]  }
 0x1d0   : > { %3724 = vmatprep.subr.bf16.mxu1 %v4026_v52  ;;  %v4093_v51 = vld [vmem:[%s4812_s15 + $0x3e0] ss:$12 sps:$4 sm:$0xff]  }
 0x1d1   : > { %v4108_v52 = vld [vmem:[%s4821_s27 + $0xc4] ss:$24 sps:$4 sm:$0xff]  }
 0x1d2   : > { %1718 = vmatpush1.bf16.msra.mxu0 %v4023_v53  ;;  %v4106_v53 = vld [vmem:[%s4821_s27 + $0xc0] ss:$24 sps:$4 sm:$0xff]  }
 0x1d3   : > { %3725 = vmatpush3.bf16.msra.mxu1 %v4027_v54  ;;  %1719 = vmatprep.subr.bf16.mxu0 %v4030_v55  ;;  %v4094_v54 = vld [vmem:[%s4812_s15 + $0x320] ss:$12 sps:$4 sm:$0xff]   ;;  %v4111_v55 = vld [vmem:[%s4821_s27 + $0x94] ss:$24 sps:$4 sm:$0xff]  }
 0x1d4   : > { %3726 = vmatprep.subr.bf16.mxu1 %v4031_v56  ;;  %v4095_v56 = vld [vmem:[%s4812_s15 + $0x3c8] ss:$12 sps:$4 sm:$0xff]  }
 0x1d6   : > { %1720 = vmatpush1.bf16.msra.mxu0 %v4028_v57  ;;  %v4109_v57 = vld [vmem:[%s4821_s27 + $0x90] ss:$24 sps:$4 sm:$0xff]  }
 0x1d7   : > { %3727 = vmatpush3.bf16.msra.mxu1 %v4032_v58  ;;  %1721 = vmatprep.subr.bf16.mxu0 %v4035_v59  ;;  %v4096_v58 = vld [vmem:[%s4812_s15 + $0x308] ss:$12 sps:$4 sm:$0xff]  }
 0x1d8   : > { %3728 = vmatprep.subr.bf16.mxu1 %v4036_v60  ;;  %v4114_v59 = vld [vmem:[%s4821_s27 + $0x64] ss:$24 sps:$4 sm:$0xff]   ;;  %v4112_v60 = vld [vmem:[%s4821_s27 + $0x60] ss:$24 sps:$4 sm:$0xff]  }
 0x1da   : > { %1722 = vmatpush1.bf16.msra.mxu0 %v4033_v61  ;;  %v4117_v61 = vld [vmem:[%s4821_s27 + $0x34] ss:$24 sps:$4 sm:$0xff]  }
 0x1db   : > { %3729 = vmatpush3.bf16.msra.mxu1 %v4037_v62  ;;  %1723 = vmatprep.subr.bf16.mxu0 %v4040_v63  ;;  %v4115_v62 = vld [vmem:[%s4821_s27 + $0x30] ss:$24 sps:$4 sm:$0xff]   ;;  %v4120_v63 = vld [vmem:[%s4821_s27 + $0x4] ss:$24 sps:$4 sm:$0xff]  }
 0x1dc   : > { %3736 = vmatprep.subr.bf16.mxu1 %v4041_v0  ;;  %v4118_v0 = vld [vmem:[%s4821_s27] ss:$24 sps:$4 sm:$0xff]  }
 0x1de   : > { %1783 = vmatmul.mubr.bf16.vlgmr.msra.gmra.mxu1 %v4897_v30  ;;  %1724 = vmatpush2.bf16.msra.mxu0 %v4038_v1  ;;  %v4073_v30 = vld [vmem:[%s4812_s15 + $0x3c0] ss:$12 sps:$4 sm:$0xff]   ;;  %v4123_v1 = vld [vmem:[%s4821_s27 + $0x2d4] ss:$24 sps:$4 sm:$0xff]  }
 0x1df   : > { %3737 = vmatpush3.bf16.msra.mxu1 %v4042_v2  ;;  %1725 = vmatprep.subr.bf16.mxu0 %v4045_v3  ;;  %v4121_v2 = vld [vmem:[%s4821_s27 + $0x2d0] ss:$24 sps:$4 sm:$0xff]   ;;  %v4126_v3 = vld [vmem:[%s4821_s27 + $0x2a4] ss:$24 sps:$4 sm:$0xff]  }
 0x1e0   : > { %3738 = vmatprep.subr.bf16.mxu1 %v4046_v4  ;;  %1823 = vmatprep.mubr.bf16.mxu1 %v4879_v14  ;;  %v4061_v14 = vld [vmem:[%s4812_s15 + $0x290] ss:$12 sps:$4 sm:$0xff]  }
 0x1e1   : > { %v4124_v4 = vld [vmem:[%s4821_s27 + $0x2a0] ss:$24 sps:$4 sm:$0xff]  }
 0x1e2   : > { %1726 = vmatpush2.bf16.msra.mxu0 %v4043_v5  ;;  %v4129_v5 = vld [vmem:[%s4821_s27 + $0x274] ss:$24 sps:$4 sm:$0xff]  }
 0x1e3   : > { %3739 = vmatpush3.bf16.msra.mxu1 %v4047_v6  ;;  %1727 = vmatprep.subr.bf16.mxu0 %v4050_v8  ;;  %v4127_v6 = vld [vmem:[%s4821_s27 + $0x270] ss:$24 sps:$4 sm:$0xff]   ;;  %v4130_v8 = vld [vmem:[%s4821_s27 + $0x240] ss:$24 sps:$4 sm:$0xff]  }
 0x1e4   : > { %3740 = vmatprep.subr.bf16.mxu1 %v4051_v9  ;;  %v4135_v9 = vld [vmem:[%s4821_s27 + $0x214] ss:$24 sps:$4 sm:$0xff]  }
 0x1e6   : > { %1728 = vmatpush2.bf16.msra.mxu0 %v4048_v10  ;;  %v4133_v10 = vld [vmem:[%s4821_s27 + $0x210] ss:$24 sps:$4 sm:$0xff]  }
 0x1e7   : > { %3741 = vmatpush3.bf16.msra.mxu1 %v4052_v11  ;;  %1729 = vmatprep.subr.bf16.mxu0 %v4055_v12  ;;  %v4138_v11 = vld [vmem:[%s4821_s27 + $0x1e4] ss:$24 sps:$4 sm:$0xff]   ;;  %v4136_v12 = vld [vmem:[%s4821_s27 + $0x1e0] ss:$24 sps:$4 sm:$0xff]  }
 0x1e8   : > { %3742 = vmatprep.subr.bf16.mxu1 %v4056_v13  ;;  %v4141_v13 = vld [vmem:[%s4821_s27 + $0x1b4] ss:$24 sps:$4 sm:$0xff]  }
 0x1ea   : > { %1730 = vmatpush2.bf16.msra.mxu0 %v4053_v15  ;;  %v4139_v15 = vld [vmem:[%s4821_s27 + $0x1b0] ss:$24 sps:$4 sm:$0xff]  }
 0x1eb   : > { %3743 = vmatpush3.bf16.msra.mxu1 %v4057_v16  ;;  %1731 = vmatprep.subr.bf16.mxu0 %v4060_v17  ;;  %v4144_v16 = vld [vmem:[%s4821_s27 + $0x184] ss:$24 sps:$4 sm:$0xff]   ;;  %v4142_v17 = vld [vmem:[%s4821_s27 + $0x180] ss:$24 sps:$4 sm:$0xff]  }
 0x1ec   : > { %3744 = vmatprep.subr.bf16.mxu1 %v4061_v14  ;;  %v4147_v14 = vld [vmem:[%s4821_s27 + $0x454] ss:$24 sps:$4 sm:$0xff]  }
 0x1ee   : > { %1732 = vmatpush2.bf16.msra.mxu0 %v4058_v18  ;;  %v4150_v18 = vld [vmem:[%s4821_s27 + $0x45c] ss:$24 sps:$4 sm:$0xff]  }
 0x1ef   : > { %3745 = vmatpush3.bf16.msra.mxu1 %v4062_v19  ;;  %1733 = vmatprep.subr.bf16.mxu0 %v4065_v20  ;;  %v4145_v19 = vld [vmem:[%s4821_s27 + $0x450] ss:$24 sps:$4 sm:$0xff]   ;;  %v4151_v20 = vld [vmem:[%s4821_s27 + $0x420] ss:$24 sps:$4 sm:$0xff]  }
 0x1f0   : > { %3746 = vmatprep.subr.bf16.mxu1 %v4066_v21  ;;  %v4153_v21 = vld [vmem:[%s4821_s27 + $0x424] ss:$24 sps:$4 sm:$0xff]  }
 0x1f2   : > { %1734 = vmatpush2.bf16.msra.mxu0 %v4063_v22  ;;  %v4157_v22 = vld [vmem:[%s4821_s27 + $0x3f0] ss:$24 sps:$4 sm:$0xff]  }
 0x1f3   : > { %3747 = vmatpush3.bf16.msra.mxu1 %v4067_v23  ;;  %1735 = vmatprep.subr.bf16.mxu0 %v4070_v24  ;;  %v4159_v23 = vld [vmem:[%s4821_s27 + $0x3f4] ss:$24 sps:$4 sm:$0xff]   ;;  %v4163_v24 = vld [vmem:[%s4821_s27 + $0x3c0] ss:$24 sps:$4 sm:$0xff]  }
 0x1f4   : > { %3748 = vmatprep.subr.bf16.mxu1 %v4071_v25  ;;  %v4165_v25 = vld [vmem:[%s4821_s27 + $0x3c4] ss:$24 sps:$4 sm:$0xff]  }
 0x1f6   : > { %1736 = vmatpush2.bf16.msra.mxu0 %v4068_v26  ;;  %v4169_v26 = vld [vmem:[%s4821_s27 + $0x390] ss:$24 sps:$4 sm:$0xff]  }
 0x1f7   : > { %3749 = vmatpush3.bf16.msra.mxu1 %v4072_v27  ;;  %1737 = vmatprep.subr.bf16.mxu0 %v4075_v28  ;;  %v4171_v27 = vld [vmem:[%s4821_s27 + $0x394] ss:$24 sps:$4 sm:$0xff]   ;;  %v4177_v28 = vld [vmem:[%s4821_s27 + $0x364] ss:$24 sps:$4 sm:$0xff]  }
 0x1f8   : > { %3750 = vmatprep.subr.bf16.mxu1 %v4076_v29  ;;  %v4175_v29 = vld [vmem:[%s4821_s27 + $0x360] ss:$24 sps:$4 sm:$0xff]  }
 0x1fa   : > { %1738 = vmatpush2.bf16.msra.mxu0 %v4073_v30  ;;  %v4183_v30 = vld [vmem:[%s4821_s27 + $0x334] ss:$24 sps:$4 sm:$0xff]  }
 0x1fb   : > { %3751 = vmatpush3.bf16.msra.mxu1 %v4077_v32  ;;  %3758 = vmatprep.subr.bf16.mxu0 %v4081_v33  ;;  %v4181_v32 = vld [vmem:[%s4821_s27 + $0x330] ss:$24 sps:$4 sm:$0xff]   ;;  %v4189_v33 = vld [vmem:[%s4821_s27 + $0x304] ss:$24 sps:$4 sm:$0xff]  }
 0x1fd   : > { %1740 = vmatmul.mubr.bf16.vlgmr.msra.gmra.mxu0 %v4078_v34 }
 0x1fe   : > { %1824 = vmatmul.mubr.bf16.vlgmr.msra.gmra.mxu1 %v4899_v31  ;;  %3759 = vmatpush3.bf16.msra.mxu0 %v4082_v35  ;;  %v4099_v31 = vld [vmem:[%s4821_s27 + $0x154] ss:$24 sps:$4 sm:$0xff]  }
 0x1ff   : > { %1864 = vmatprep.mubr.bf16.mxu0 %v4943_v7  ;;  %3760 = vmatprep.subr.bf16.mxu0 %v4083_v36  ;;  %v4132_v7 = vld [vmem:[%s4821_s27 + $0x244] ss:$24 sps:$4 sm:$0xff]   ;;  %v4566_v36 = vmov 0  }
 0x200   : > { %2758 = vmatprep.subr.bf16.mxu1 %v4099_v31  ;;  %v4195_v35 = vld [vmem:[%s4821_s27 + $0x15c] ss:$24 sps:$4 sm:$0xff]  }
 0x201   : > { %2759 = vmatpush1.bf16.msra.mxu1 %v4097_v42  ;;  %v806_v31 = vld [vmem:[%s323_s18] sm:$0x7] }
 0x202   : > { %3761 = vmatpush3.bf16.msra.mxu0 %v4084_v37  ;;  %2760 = vmatprep.subr.bf16.mxu1 %v4102_v44  ;;  %v808_v37 = vlaneseq }
 0x203   : > { %3762 = vmatprep.subr.bf16.mxu0 %v4085_v38 }
 0x205   : > { %2761 = vmatpush1.bf16.msra.mxu1 %v4100_v45 }
 0x206   : > { %3763 = vmatpush3.bf16.msra.mxu0 %v4086_v39  ;;  %2762 = vmatprep.subr.bf16.mxu1 %v4105_v47  ;;  %v5040_v39 = vshrl.u32 %v808_v37, 7 }
 0x207   : > { %3764 = vmatprep.subr.bf16.mxu0 %v4087_v40 }
 0x208   : > { %v814_v42 = vsub.s32 1, %v5040_v39 }
 0x209   : > { %2763 = vmatpush1.bf16.msra.mxu1 %v4103_v50 }
 0x20a   : > { %3765 = vmatpush3.bf16.msra.mxu0 %v4088_v41  ;;  %2764 = vmatprep.subr.bf16.mxu1 %v4108_v52 }
 0x20b   : > { %3766 = vmatprep.subr.bf16.mxu0 %v4089_v43  ;;  %v810_v43 = vsub.s32 0, %v5040_v39 }
 0x20d   : > { %2765 = vmatpush1.bf16.msra.mxu1 %v4106_v53  ;;  %v811_v47 = vrot.slane %v806_v31, %v810_v43 }
 0x20e   : > { %3767 = vmatpush3.bf16.msra.mxu0 %v4090_v46  ;;  %2766 = vmatprep.subr.bf16.mxu1 %v4111_v55  ;;  %v815_v46 = vrot.slane %v806_v31, %v814_v42 }
 0x20f   : > { %3768 = vmatprep.subr.bf16.mxu0 %v4091_v48 }
 0x211   : > { %2767 = vmatpush1.bf16.msra.mxu1 %v4109_v57 }
 0x212   : > { %3769 = vmatpush3.bf16.msra.mxu0 %v4092_v49  ;;  %2768 = vmatprep.subr.bf16.mxu1 %v4114_v59 }
 0x213   : > { %3770 = vmatprep.subr.bf16.mxu0 %v4093_v51 }
 0x215   : > { %2769 = vmatpush1.bf16.msra.mxu1 %v4112_v60 }
 0x216   : > { %3771 = vmatpush3.bf16.msra.mxu0 %v4094_v54  ;;  %2770 = vmatprep.subr.bf16.mxu1 %v4117_v61 }
 0x217   : > { %3772 = vmatprep.subr.bf16.mxu0 %v4095_v56 }
 0x219   : > { %2771 = vmatpush1.bf16.msra.mxu1 %v4115_v62 }
 0x21a   : > { %3773 = vmatpush3.bf16.msra.mxu0 %v4096_v58  ;;  %2772 = vmatprep.subr.bf16.mxu1 %v4120_v63 }
 0x21b   : > { %2801 = vmatprep.subr.bf16.mxu0 %v4147_v14  ;;  %v4160_v14 = vld [vmem:[%s4821_s27 + $0x3f8] ss:$24 sps:$4 sm:$0xff]  }
 0x21d   : > { %1865 = vmatmul.mubr.bf16.vlgmr.msra.gmra.mxu0 %v4078_v34  ;;  %2773 = vmatpush1.bf16.msra.mxu1 %v4118_v0  ;;  %v4187_v34 = vld [vmem:[%s4821_s27 + $0x300] ss:$24 sps:$4 sm:$0xff]  }
 0x21e   : > { %2774 = vmatprep.subr.bf16.mxu1 %v4123_v1  ;;  %2802 = vmatpush1.bf16.msra.mxu0 %v4145_v19  ;;  %v4168_v19 = vld [vmem:[%s4821_s27 + $0x3cc] ss:$24 sps:$4 sm:$0xff]  }
 0x21f   : > { %2803 = vmatprep.subr.bf16.mxu0 %v4153_v21  ;;  %2833 = vmatprep.mubr.bf16.mxu0 %v4566_v36 }
 0x221   : > { %2775 = vmatpush2.bf16.msra.mxu1 %v4121_v2 }
 0x222   : > { %2776 = vmatprep.subr.bf16.mxu1 %v4126_v3  ;;  %2804 = vmatpush1.bf16.msra.mxu0 %v4151_v20  ;;  %v4166_v20 = vld [vmem:[%s4821_s27 + $0x3c8] ss:$24 sps:$4 sm:$0xff]  }
 0x223   : > { %2805 = vmatprep.subr.bf16.mxu0 %v4159_v23  ;;  %v818_v23 = vsub.s32 2, %v5040_v39 }
 0x225   : > { %2777 = vmatpush2.bf16.msra.mxu1 %v4124_v4 }
 0x226   : > { %2778 = vmatprep.subr.bf16.mxu1 %v4129_v5  ;;  %2806 = vmatpush1.bf16.msra.mxu0 %v4157_v22  ;;  %v4174_v22 = vld [vmem:[%s4821_s27 + $0x39c] ss:$24 sps:$4 sm:$0xff]  }
 0x227   : > { %2807 = vmatprep.subr.bf16.mxu0 %v4165_v25 }
 0x229   : > { %2779 = vmatpush2.bf16.msra.mxu1 %v4127_v6 }
 0x22a   : > { %2780 = vmatprep.subr.bf16.mxu1 %v4132_v7  ;;  %2808 = vmatpush1.bf16.msra.mxu0 %v4163_v24  ;;  %v4172_v24 = vld [vmem:[%s4821_s27 + $0x398] ss:$24 sps:$4 sm:$0xff]  }
 0x22b   : > { %2809 = vmatprep.subr.bf16.mxu0 %v4171_v27  ;;  %v819_v27 = vrot.slane %v806_v31, %v818_v23  ;;  %v4192_v31 = vld [vmem:[%s4821_s27 + $0x30c] ss:$24 sps:$4 sm:$0xff]  }
 0x22d   : > { %2781 = vmatpush2.bf16.msra.mxu1 %v4130_v8 }
 0x22e   : > { %2782 = vmatprep.subr.bf16.mxu1 %v4135_v9  ;;  %2810 = vmatpush1.bf16.msra.mxu0 %v4169_v26  ;;  %v4180_v26 = vld [vmem:[%s4821_s27 + $0x36c] ss:$24 sps:$4 sm:$0xff]  }
 0x22f   : > { %2811 = vmatprep.subr.bf16.mxu0 %v4177_v28 }
 0x231   : > { %2783 = vmatpush2.bf16.msra.mxu1 %v4133_v10  ;;  %v4148_v10 = vld [vmem:[%s4821_s27 + $0x458] ss:$24 sps:$4 sm:$0xff]  }
 0x232   : > { %2784 = vmatprep.subr.bf16.mxu1 %v4138_v11  ;;  %2812 = vmatpush1.bf16.msra.mxu0 %v4175_v29  ;;  %v4178_v29 = vld [vmem:[%s4821_s27 + $0x368] ss:$24 sps:$4 sm:$0xff]  }
 0x233   : > { %2813 = vmatprep.subr.bf16.mxu0 %v4183_v30 }
 0x235   : > { %2785 = vmatpush2.bf16.msra.mxu1 %v4136_v12 }
 0x236   : > { %2786 = vmatprep.subr.bf16.mxu1 %v4141_v13  ;;  %2814 = vmatpush1.bf16.msra.mxu0 %v4181_v32  ;;  %v4156_v13 = vld [vmem:[%s4821_s27 + $0x42c] ss:$24 sps:$4 sm:$0xff]  }
 0x237   : > { %2815 = vmatprep.subr.bf16.mxu0 %v4189_v33  ;;  %v4186_v33 = vld [vmem:[%s4821_s27 + $0x33c] ss:$24 sps:$4 sm:$0xff]  }
 0x239   : > { %2787 = vmatpush2.bf16.msra.mxu1 %v4139_v15  ;;  %v4154_v15 = vld [vmem:[%s4821_s27 + $0x428] ss:$24 sps:$4 sm:$0xff]  }
 0x23a   : > { %2788 = vmatprep.subr.bf16.mxu1 %v4144_v16  ;;  %2816 = vmatpush1.bf16.msra.mxu0 %v4187_v34 }
 0x23b   : > { %2844 = vmatprep.subr.bf16.mxu0 %v4195_v35 }
 0x23d   : > { %2789 = vmatpush2.bf16.msra.mxu1 %v4142_v17  ;;  %v4162_v17 = vld [vmem:[%s4821_s27 + $0x3fc] ss:$24 sps:$4 sm:$0xff]  }
 0x23e   : > { %2887 = vmatprep.subr.bf16.mxu1 %v4150_v18 }
 0x27d   : > { %v1655_v38 = vpop.f32.mrf.mxu0 }
 0x27e   : > { %v1698_v41 = vpop.f32.mrf.mxu1  ;;  %v1656_v52 = vadd.f32 %v1655_v38, %v811_v47 }
 0x27f   : > { %v1657_v40 = vpop.f32.mrf.mxu0 }
 0x280   : > { %v1700_v45 = vpop.f32.mrf.mxu1  ;;  %v1658_v50 = vadd.f32 %v1657_v40, %v815_v46  ;;  %v1699_v59 = vadd.f32 %v1698_v41, %v1656_v52  ;;  %v4190_v52 = vld [vmem:[%s4821_s27 + $0x308] ss:$24 sps:$4 sm:$0xff]  }
 0x281   : > { %v1659_v44 = vpop.f32.mrf.mxu0 }
 0x282   : > { %v1702_v49 = vpop.f32.mrf.mxu1  ;;  %v1660_v51 = vadd.f32 %v1659_v44, %v811_v47  ;;  %v1701_v57 = vadd.f32 %v1700_v45, %v1658_v50  ;;  %v4184_v44 = vld [vmem:[%s4821_s27 + $0x338] ss:$24 sps:$4 sm:$0xff]  }
 0x283   : > { %v1661_v48 = vpop.f32.mrf.mxu0 }
 0x284   : > { %v1662_v54 = vadd.f32 %v1661_v48, %v815_v46  ;;  %v1704_v55 = vpop.f32.mrf.mxu1  ;;  %v1703_v58 = vadd.f32 %v1702_v49, %v1660_v51 }
 0x286   : > { %v1705_v62 = vadd.f32 %v1704_v55, %v1662_v54 }
 0x29e   : > { %v3730_v60 = vpop.f32.mrf.mxu1 }
 0x2a0   : > { %v3731_v4 = vpop.f32.mrf.mxu1 }
 0x2a1   : > { %v3732_v28 = vadd.f32 %v3731_v4, %v3730_v60  ;;  %v4201_v60 = vld [vmem:[%s4821_s27 + $0x12c] ss:$24 sps:$4 sm:$0xff]  }
 0x2a2   : > { %v3733_v11 = vpop.f32.mrf.mxu1  ;;  %v4213_v4 = vld [vmem:[%s4821_s27 + $0xcc] ss:$24 sps:$4 sm:$0xff]  }
 0x2a3   : > { %v1785_v34 = vadd.f32 %v3732_v28, %v819_v27  ;;  %v4241_v28 = vld [vmem:[%s4821_s27 + $0x2d8] ss:$24 sps:$4 sm:$0xff]  }
 0x2a4   : > { %v3734_v16 = vpop.f32.mrf.mxu1 }
 0x2a5   : > { %v3735_v35 = vadd.f32 %v3734_v16, %v3733_v11  ;;  %v4220_v11 = vld [vmem:[%s4821_s27 + $0xa0] ss:$24 sps:$4 sm:$0xff]  }
 0x2a6   : > { %v4223_v16 = vld [vmem:[%s4821_s27 + $0x68] ss:$24 sps:$4 sm:$0xff]  }
 0x2a7   : > { %v1788_v46 = vadd.f32 %v3735_v35, %v819_v27  ;;  %v4246_v27 = vld [vmem:[%s4821_s27 + $0x2e4] ss:$24 sps:$4 sm:$0xff]  }
 0x2a8   : > { %v4255_v35 = vld [vmem:[%s4821_s27 + $0x27c] ss:$24 sps:$4 sm:$0xff]  }
 0x2bd   : > { %v1741_v53 = vpop.f32.mrf.mxu0 }
 0x2be   : > { %v1742_v1 = vadd.f32 %v1741_v53, %v1699_v59  ;;  %v3752_v18 = vpop.f32.mrf.mxu1  ;;  %v4198_v53 = vld [vmem:[%s4821_s27 + $0x164] ss:$24 sps:$4 sm:$0xff]  }
 0x2bf   : > { %v1743_v56 = vpop.f32.mrf.mxu0 }
 0x2c0   : > { %v1744_v63 = vadd.f32 %v1743_v56, %v1701_v57  ;;  %v1873_v8 = vmax.f32 %v1742_v1, 0.0  ;;  %v3753_v21 = vpop.f32.mrf.mxu1  ;;  %v4193_v57 = vld [vmem:[%s4821_s27 + $0x158] ss:$24 sps:$4 sm:$0xff]   ;;  %v4210_v1 = vld [vmem:[%s4821_s27 + $0x104] ss:$24 sps:$4 sm:$0xff]  }
 0x2c1   : > { %v1745_v61 = vpop.f32.mrf.mxu0  ;;  %v3754_v37 = vadd.f32 %v3753_v21, %v3752_v18  ;;  %v4234_v18 = vld [vmem:[%s4821_s27 + $0x44] ss:$24 sps:$4 sm:$0xff]  }
 0x2c2   : > { %v1746_v0 = vadd.f32 %v1745_v61, %v1703_v58  ;;  %v1874_v6 = vmax.f32 %v1744_v63, 0.0  ;;  %v3755_v25 = vpop.f32.mrf.mxu1  ;;  %v4196_v58 = vld [vmem:[%s4821_s27 + $0x160] ss:$24 sps:$4 sm:$0xff]   ;;  %v4204_v61 = vld [vmem:[%s4821_s27 + $0x134] ss:$24 sps:$4 sm:$0xff]  }
 0x2c3   : > { %v1747_v2 = vpop.f32.mrf.mxu0  ;;  %v1826_v47 = vadd.f32 %v3754_v37, %v1785_v34  ;;  %v4202_v63 = vld [vmem:[%s4821_s27 + $0x130] ss:$24 sps:$4 sm:$0xff]   ;;  %v4237_v21 = vld [vmem:[%s4821_s27 + $0xc] ss:$24 sps:$4 sm:$0xff]  }
 0x2c4   : > { %v1748_v3 = vadd.f32 %v1747_v2, %v1705_v62  ;;  %v1876_v5 = vmax.f32 %v1746_v0, 0.0  ;;  %v3756_v30 = vpop.f32.mrf.mxu1  ;;  %v4199_v62 = vld [vmem:[%s4821_s27 + $0x128] ss:$24 sps:$4 sm:$0xff]   ;;  %v4207_v0 = vld [vmem:[%s4821_s27 + $0xfc] ss:$24 sps:$4 sm:$0xff]  }
 0x2c5   : > { %v3757_v40 = vadd.f32 %v3756_v30, %v3755_v25  ;;  %v4205_v2 = vld [vmem:[%s4821_s27 + $0xf8] ss:$24 sps:$4 sm:$0xff]   ;;  %v4249_v30 = vld [vmem:[%s4821_s27 + $0x2ac] ss:$24 sps:$4 sm:$0xff]  }
 0x2c6   : > { %v1877_v7 = vmax.f32 %v1748_v3, 0.0  ;;  %v5053_v12 = vpack.c.bf16 %v1876_v5, %v1873_v8  ;;  %v4208_v3 = vld [vmem:[%s4821_s27 + $0x100] ss:$24 sps:$4 sm:$0xff]   ;;  %v4216_v5 = vld [vmem:[%s4821_s27 + $0xd4] ss:$24 sps:$4 sm:$0xff]  }
 0x2c7   : > { %v1829_v49 = vadd.f32 %v3757_v40, %v1788_v46  ;;  %v4219_v8 = vld [vmem:[%s4821_s27 + $0x9c] ss:$24 sps:$4 sm:$0xff]   ;;  %v4238_v25 = vld [vmem:[%s4821_s27 + $0x10] ss:$24 sps:$4 sm:$0xff]   ;;  %v4256_v40 = vld [vmem:[%s4821_s27 + $0x280] ss:$24 sps:$4 sm:$0xff]  }
 0x2c8   : > { %v5050_v9 = vpack.c.bf16 %v1877_v7, %v1874_v6  ;;  %v4211_v6 = vld [vmem:[%s4821_s27 + $0xc8] ss:$24 sps:$4 sm:$0xff]   ;;  %v4258_v37 = vld [vmem:[%s4821_s27 + $0x284] ss:$24 sps:$4 sm:$0xff]  }
 0x2c9   : > { %v4214_v7 = vld [vmem:[%s4821_s27 + $0xd0] ss:$24 sps:$4 sm:$0xff]   ;;  %v4267_v46 = vld [vmem:[%s4821_s27 + $0x21c] ss:$24 sps:$4 sm:$0xff]  }
 0x2ca   : > { %2790 = vmatprep.mubr.bf16.mxu1 %v5050_v9  ;;  %v4250_v34 = vld [vmem:[%s4821_s27 + $0x2b0] ss:$24 sps:$4 sm:$0xff]  }
 0x2cb   : > { %2791 = vmatmul.mubr.bf16.vlgmr.msra.gmra.mxu1 %v5053_v12 }
 0x2cc   : > { %2888 = vmatpush1.bf16.msra.mxu1 %v4148_v10  ;;  %2919 = vmatprep.mubr.bf16.mxu1 %v4566_v36  ;;  %v4217_v10 = vld [vmem:[%s4821_s27 + $0x98] ss:$24 sps:$4 sm:$0xff]  }
 0x2cd   : > { %2889 = vmatprep.subr.bf16.mxu1 %v4156_v13  ;;  %v4225_v13 = vld [vmem:[%s4821_s27 + $0x6c] ss:$24 sps:$4 sm:$0xff]  }
 0x2d0   : > { %2890 = vmatpush1.bf16.msra.mxu1 %v4154_v15  ;;  %v4228_v15 = vld [vmem:[%s4821_s27 + $0x74] ss:$24 sps:$4 sm:$0xff]  }
 0x2d1   : > { %2891 = vmatprep.subr.bf16.mxu1 %v4162_v17  ;;  %v4226_v17 = vld [vmem:[%s4821_s27 + $0x70] ss:$24 sps:$4 sm:$0xff]  }
 0x2d4   : > { %2892 = vmatpush1.bf16.msra.mxu1 %v4160_v14  ;;  %v4231_v14 = vld [vmem:[%s4821_s27 + $0x3c] ss:$24 sps:$4 sm:$0xff]  }
 0x2d5   : > { %2893 = vmatprep.subr.bf16.mxu1 %v4168_v19  ;;  %v4229_v19 = vld [vmem:[%s4821_s27 + $0x38] ss:$24 sps:$4 sm:$0xff]  }
 0x2d8   : > { %2894 = vmatpush1.bf16.msra.mxu1 %v4166_v20  ;;  %v4232_v20 = vld [vmem:[%s4821_s27 + $0x40] ss:$24 sps:$4 sm:$0xff]  }
 0x2d9   : > { %2895 = vmatprep.subr.bf16.mxu1 %v4174_v22  ;;  %v4240_v22 = vld [vmem:[%s4821_s27 + $0x14] ss:$24 sps:$4 sm:$0xff]  }
 0x2dc   : > { %2896 = vmatpush1.bf16.msra.mxu1 %v4172_v24  ;;  %v4235_v24 = vld [vmem:[%s4821_s27 + $0x8] ss:$24 sps:$4 sm:$0xff]  }
 0x2dd   : > { %v3774_v32 = vpop.f32.mrf.mxu0  ;;  %2897 = vmatprep.subr.bf16.mxu1 %v4180_v26  ;;  %v4243_v26 = vld [vmem:[%s4821_s27 + $0x2dc] ss:$24 sps:$4 sm:$0xff]  }
 0x2df   : > { %v3775_v38 = vpop.f32.mrf.mxu0 }
 0x2e0   : > { %v3776_v41 = vadd.f32 %v3775_v38, %v3774_v32  ;;  %2898 = vmatpush1.bf16.msra.mxu1 %v4178_v29  ;;  %v4244_v29 = vld [vmem:[%s4821_s27 + $0x2e0] ss:$24 sps:$4 sm:$0xff]   ;;  %v4252_v32 = vld [vmem:[%s4821_s27 + $0x2b4] ss:$24 sps:$4 sm:$0xff]  }
 0x2e1   : > { %v3777_v45 = vpop.f32.mrf.mxu0  ;;  %2899 = vmatprep.subr.bf16.mxu1 %v4186_v33  ;;  %v4247_v33 = vld [vmem:[%s4821_s27 + $0x2a8] ss:$24 sps:$4 sm:$0xff]   ;;  %v4253_v38 = vld [vmem:[%s4821_s27 + $0x278] ss:$24 sps:$4 sm:$0xff]  }
 0x2e2   : > { %v1867_v50 = vadd.f32 %v3776_v41, %v1826_v47  ;;  %v4261_v41 = vld [vmem:[%s4821_s27 + $0x24c] ss:$24 sps:$4 sm:$0xff]  }
 0x2e3   : > { %v3778_v48 = vpop.f32.mrf.mxu0  ;;  %v4270_v47 = vld [vmem:[%s4821_s27 + $0x224] ss:$24 sps:$4 sm:$0xff]  }
 0x2e4   : > { %v3779_v51 = vadd.f32 %v3778_v48, %v3777_v45  ;;  %2900 = vmatpush1.bf16.msra.mxu1 %v4184_v44  ;;  %v1875_v55 = vmax.f32 %v1867_v50, 0.0  ;;  %v4264_v44 = vld [vmem:[%s4821_s27 + $0x254] ss:$24 sps:$4 sm:$0xff]   ;;  %v4259_v45 = vld [vmem:[%s4821_s27 + $0x248] ss:$24 sps:$4 sm:$0xff]  }
 0x2e5   : > { %2901 = vmatprep.subr.bf16.mxu1 %v4192_v31  ;;  %v4262_v31 = vld [vmem:[%s4821_s27 + $0x250] ss:$24 sps:$4 sm:$0xff]   ;;  %v4273_v50 = vld [vmem:[%s4821_s27 + $0x1ec] ss:$24 sps:$4 sm:$0xff]  }
 0x2e6   : > { %v1870_v54 = vadd.f32 %v3779_v51, %v1829_v49  ;;  %v4265_v48 = vld [vmem:[%s4821_s27 + $0x218] ss:$24 sps:$4 sm:$0xff]   ;;  %v4276_v51 = vld [vmem:[%s4821_s27 + $0x1f4] ss:$24 sps:$4 sm:$0xff]  }
 0x2e7   : > { %v4268_v49 = vld [vmem:[%s4821_s27 + $0x220] ss:$24 sps:$4 sm:$0xff]  }
 0x2e8   : > { %v1878_v56 = vmax.f32 %v1870_v54, 0.0  ;;  %2902 = vmatpush1.bf16.msra.mxu1 %v4190_v52  ;;  %v4271_v52 = vld [vmem:[%s4821_s27 + $0x1e8] ss:$24 sps:$4 sm:$0xff]   ;;  %v4279_v54 = vld [vmem:[%s4821_s27 + $0x1bc] ss:$24 sps:$4 sm:$0xff]  }
 0x2e9   : > { %2930 = vmatprep.subr.bf16.mxu1 %v4198_v53  ;;  %v4274_v53 = vld [vmem:[%s4821_s27 + $0x1f0] ss:$24 sps:$4 sm:$0xff]  }
 0x2ea   : > { %v5078_v59 = vpack.c.bf16 %v1878_v56, %v1875_v55  ;;  %v4282_v55 = vld [vmem:[%s4821_s27 + $0x1c4] ss:$24 sps:$4 sm:$0xff]   ;;  %v4277_v56 = vld [vmem:[%s4821_s27 + $0x1b8] ss:$24 sps:$4 sm:$0xff]  }
 0x2ec   : > { %2834 = vmatmul.mubr.bf16.vlgmr.msra.gmra.mxu0 %v5078_v59  ;;  %2920 = vmatmul.mubr.bf16.vlgmr.msra.gmra.mxu1 %v5078_v59 }
 0x2ed   : > { %2845 = vmatpush1.bf16.msra.mxu0 %v4193_v57  ;;  %2931 = vmatpush1.bf16.msra.mxu1 %v4196_v58  ;;  %v4280_v57 = vld [vmem:[%s4821_s27 + $0x1c0] ss:$24 sps:$4 sm:$0xff]   ;;  %v4285_v58 = vld [vmem:[%s4821_s27 + $0x18c] ss:$24 sps:$4 sm:$0xff]  }
 0x2ee   : > { %2876 = vmatprep.mubr.bf16.mxu0 %v5050_v9  ;;  %2962 = vmatprep.mubr.bf16.mxu1 %v5050_v9  ;;  %v4222_v9 = vld [vmem:[%s4821_s27 + $0xa4] ss:$24 sps:$4 sm:$0xff]  }
 0x2ef   : > { %2846 = vmatprep.subr.bf16.mxu0 %v4201_v60  ;;  %2932 = vmatprep.subr.bf16.mxu1 %v4204_v61  ;;  %v4288_v60 = vld [vmem:[%s4821_s27 + $0x194] ss:$24 sps:$4 sm:$0xff]   ;;  %v4283_v61 = vld [vmem:[%s4821_s27 + $0x188] ss:$24 sps:$4 sm:$0xff]  }
 0x2f1   : > { %2847 = vmatpush1.bf16.msra.mxu0 %v4199_v62  ;;  %2933 = vmatpush1.bf16.msra.mxu1 %v4202_v63  ;;  %v4286_v62 = vld [vmem:[%s4821_s27 + $0x190] ss:$24 sps:$4 sm:$0xff]   ;;  %v4291_v63 = vld [vmem:[%s4821_s27 + $0x464] ss:$24 sps:$4 sm:$0xff]  }
 0x2f2   : > { %2848 = vmatprep.subr.bf16.mxu0 %v4207_v0  ;;  %2934 = vmatprep.subr.bf16.mxu1 %v4210_v1  ;;  %v4289_v0 = vld [vmem:[%s4821_s27 + $0x460] ss:$24 sps:$4 sm:$0xff]   ;;  %v4294_v1 = vld [vmem:[%s4821_s27 + $0x434] ss:$24 sps:$4 sm:$0xff]  }
 0x2f5   : > { %2849 = vmatpush1.bf16.msra.mxu0 %v4205_v2  ;;  %2935 = vmatpush1.bf16.msra.mxu1 %v4208_v3  ;;  %v4292_v2 = vld [vmem:[%s4821_s27 + $0x430] ss:$24 sps:$4 sm:$0xff]   ;;  %v4297_v3 = vld [vmem:[%s4821_s27 + $0x404] ss:$24 sps:$4 sm:$0xff]  }
 0x2f6   : > { %2850 = vmatprep.subr.bf16.mxu0 %v4213_v4  ;;  %2936 = vmatprep.subr.bf16.mxu1 %v4216_v5  ;;  %v4295_v4 = vld [vmem:[%s4821_s27 + $0x400] ss:$24 sps:$4 sm:$0xff]   ;;  %v4300_v5 = vld [vmem:[%s4821_s27 + $0x3d4] ss:$24 sps:$4 sm:$0xff]  }
 0x2f9   : > { %2851 = vmatpush1.bf16.msra.mxu0 %v4211_v6  ;;  %2937 = vmatpush1.bf16.msra.mxu1 %v4214_v7  ;;  %v4298_v6 = vld [vmem:[%s4821_s27 + $0x3d0] ss:$24 sps:$4 sm:$0xff]   ;;  %v4301_v7 = vld [vmem:[%s4821_s27 + $0x3a0] ss:$24 sps:$4 sm:$0xff]  }
 0x2fa   : > { %2852 = vmatprep.subr.bf16.mxu0 %v4219_v8  ;;  %2938 = vmatprep.subr.bf16.mxu1 %v4222_v9  ;;  %v4306_v8 = vld [vmem:[%s4821_s27 + $0x374] ss:$24 sps:$4 sm:$0xff]   ;;  %v4309_v9 = vld [vmem:[%s4821_s27 + $0x344] ss:$24 sps:$4 sm:$0xff]  }
 0x2fd   : > { %2853 = vmatpush1.bf16.msra.mxu0 %v4217_v10  ;;  %2939 = vmatpush1.bf16.msra.mxu1 %v4220_v11  ;;  %v4307_v10 = vld [vmem:[%s4821_s27 + $0x340] ss:$24 sps:$4 sm:$0xff]   ;;  %v4312_v11 = vld [vmem:[%s4821_s27 + $0x314] ss:$24 sps:$4 sm:$0xff]  }
 0x2fe   : > { %2854 = vmatprep.subr.bf16.mxu0 %v4225_v13  ;;  %2940 = vmatprep.subr.bf16.mxu1 %v4228_v15  ;;  %v4310_v13 = vld [vmem:[%s4821_s27 + $0x310] ss:$24 sps:$4 sm:$0xff]  }
 0x301   : > { %2855 = vmatpush1.bf16.msra.mxu0 %v4223_v16  ;;  %2941 = vmatpush1.bf16.msra.mxu1 %v4226_v17  ;;  %v1879_v17 = vld [vmem:[#allocation3 + $0x40] sm:$0xff] }
 0x302   : > { %2856 = vmatprep.subr.bf16.mxu0 %v4231_v14  ;;  %2942 = vmatprep.subr.bf16.mxu1 %v4234_v18 }
 0x305   : > { %2857 = vmatpush1.bf16.msra.mxu0 %v4229_v19  ;;  %2943 = vmatpush1.bf16.msra.mxu1 %v4232_v20  ;;  %v1880_v20 = vld [vmem:[#allocation3 + $0x8] sm:$0xff] }
 0x306   : > { %2858 = vmatprep.subr.bf16.mxu0 %v4237_v21  ;;  %2944 = vmatprep.subr.bf16.mxu1 %v4240_v22 }
 0x309   : > { %2859 = vmatpush1.bf16.msra.mxu0 %v4235_v24  ;;  %2945 = vmatpush1.bf16.msra.mxu1 %v4238_v25  ;;  %v1885_v25 = vld [vmem:[#allocation3 + $0x10] sm:$0xff] }
 0x30a   : > { %2860 = vmatprep.subr.bf16.mxu0 %v4243_v26  ;;  %2946 = vmatprep.subr.bf16.mxu1 %v4246_v27 }
 0x30d   : > { %2861 = vmatpush2.bf16.msra.mxu0 %v4241_v28  ;;  %2947 = vmatpush2.bf16.msra.mxu1 %v4244_v29 }
 0x30e   : > { %2862 = vmatprep.subr.bf16.mxu0 %v4249_v30  ;;  %2948 = vmatprep.subr.bf16.mxu1 %v4252_v32  ;;  %v1886_v30 = vld [vmem:[#allocation3 + $0x38] sm:$0xff] }
 0x311   : > { %2863 = vmatpush2.bf16.msra.mxu0 %v4247_v33  ;;  %2949 = vmatpush2.bf16.msra.mxu1 %v4250_v34 }
 0x312   : > { %2864 = vmatprep.subr.bf16.mxu0 %v4255_v35  ;;  %2950 = vmatprep.subr.bf16.mxu1 %v4258_v37 }
 0x315   : > { %2865 = vmatpush2.bf16.msra.mxu0 %v4253_v38  ;;  %2951 = vmatpush2.bf16.msra.mxu1 %v4256_v40  ;;  %v1881_v38 = vld [vmem:[#allocation3 + $0x20] sm:$0xff] }
 0x316   : > { %2866 = vmatprep.subr.bf16.mxu0 %v4261_v41  ;;  %2952 = vmatprep.subr.bf16.mxu1 %v4264_v44 }
 0x319   : > { %2867 = vmatpush2.bf16.msra.mxu0 %v4259_v45  ;;  %2953 = vmatpush2.bf16.msra.mxu1 %v4262_v31  ;;  %v1882_v45 = vld [vmem:[#allocation3 + $0x58] sm:$0xff] }
 0x31a   : > { %2868 = vmatprep.subr.bf16.mxu0 %v4267_v46  ;;  %2954 = vmatprep.subr.bf16.mxu1 %v4270_v47 }
 0x31d   : > { %2869 = vmatpush2.bf16.msra.mxu0 %v4265_v48  ;;  %2955 = vmatpush2.bf16.msra.mxu1 %v4268_v49  ;;  %v1887_v48 = vld [vmem:[#allocation3 + $0x48] sm:$0xff] }
 0x31e   : > { %2870 = vmatprep.subr.bf16.mxu0 %v4273_v50  ;;  %2956 = vmatprep.subr.bf16.mxu1 %v4276_v51 }
 0x321   : > { %2871 = vmatpush2.bf16.msra.mxu0 %v4271_v52  ;;  %2957 = vmatpush2.bf16.msra.mxu1 %v4274_v53  ;;  %v1888_v53 = vld [vmem:[#allocation3 + $0x50] sm:$0xff] }
 0x322   : > { %2872 = vmatprep.subr.bf16.mxu0 %v4279_v54  ;;  %2958 = vmatprep.subr.bf16.mxu1 %v4282_v55 }
 0x325   : > { %2873 = vmatpush2.bf16.msra.mxu0 %v4277_v56  ;;  %2959 = vmatpush2.bf16.msra.mxu1 %v4280_v57 }
 0x326   : > { %2874 = vmatprep.subr.bf16.mxu0 %v4285_v58  ;;  %2960 = vmatprep.subr.bf16.mxu1 %v4288_v60 }
 0x329   : > { %2875 = vmatpush2.bf16.msra.mxu0 %v4283_v61  ;;  %2961 = vmatpush2.bf16.msra.mxu1 %v4286_v62  ;;  %v1883_v61 = vld [vmem:[#allocation3 + $0x28] sm:$0xff] }
 0x32a   : > { %2973 = vmatprep.subr.bf16.mxu0 %v4291_v63 }
 0x32c   : > { %2877 = vmatmul.mubr.bf16.vlgmr.msra.gmra.mxu0 %v5053_v12  ;;  %2963 = vmatmul.mubr.bf16.vlgmr.msra.gmra.mxu1 %v5053_v12  ;;  %v4303_v12 = vld [vmem:[%s4821_s27 + $0x3a4] ss:$24 sps:$4 sm:$0xff]  }
 0x32d   : > { %2974 = vmatpush1.bf16.msra.mxu0 %v4289_v0  ;;  %3005 = vmatprep.mubr.bf16.mxu0 %v4566_v36  ;;  %v4304_v36 = vld [vmem:[%s4821_s27 + $0x370] ss:$24 sps:$4 sm:$0xff]  }
 0x32e   : > { %2975 = vmatprep.subr.bf16.mxu0 %v4294_v1  ;;  %v1884_v1 = vld [vmem:[#allocation3 + $0x30] sm:$0xff] }
 0x331   : > { %2976 = vmatpush1.bf16.msra.mxu0 %v4292_v2 }
 0x332   : > { %2977 = vmatprep.subr.bf16.mxu0 %v4297_v3 }
 0x335   : > { %2978 = vmatpush1.bf16.msra.mxu0 %v4295_v4 }
 0x336   : > { %2979 = vmatprep.subr.bf16.mxu0 %v4300_v5  ;;  %v1889_v5 = vld [vmem:[#allocation3] sm:$0xff] }
 0x339   : > { %2980 = vmatpush1.bf16.msra.mxu0 %v4298_v6 }
 0x33a   : > { %2981 = vmatprep.subr.bf16.mxu0 %v4303_v12 }
 0x33d   : > { %2982 = vmatpush1.bf16.msra.mxu0 %v4301_v7 }
 0x33e   : > { %2983 = vmatprep.subr.bf16.mxu0 %v4306_v8 }
 0x341   : > { %2984 = vmatpush1.bf16.msra.mxu0 %v4304_v36  ;;  %v1890_v36 = vld [vmem:[#allocation3 + $0x18] sm:$0xff] }
 0x342   : > { %2985 = vmatprep.subr.bf16.mxu0 %v4309_v9 }
 0x345   : > { %2986 = vmatpush1.bf16.msra.mxu0 %v4307_v10 }
 0x346   : > { %2987 = vmatprep.subr.bf16.mxu0 %v4312_v11 }
 0x349   : > { %2988 = vmatpush1.bf16.msra.mxu0 %v4310_v13 }
 0x34c   : > { %3006 = vmatmul.mubr.bf16.vlgmr.msra.gmra.mxu0 %v5078_v59 }
 0x38b   : > { %v2792_v15 = vpop.f32.mrf.mxu1 }
 0x38d   : > { %v2794_v16 = vpop.f32.mrf.mxu1 }
 0x38f   : > { %v2796_v19 = vpop.f32.mrf.mxu1 }
 0x391   : > { %v2798_v29 = vpop.f32.mrf.mxu1 }
 0x3ac   : > { %v2835_v14 = vpop.f32.mrf.mxu0  ;;  %v2921_v35 = vpop.f32.mrf.mxu1 }
 0x3ad   : > { %v2836_v18 = vadd.f32 %v2835_v14, %v2792_v15 }
 0x3ae   : > { %v2837_v21 = vpop.f32.mrf.mxu0  ;;  %v2923_v37 = vpop.f32.mrf.mxu1 }
 0x3af   : > { %v3016_v22 = vadd.f32 %v2836_v18, %v1879_v17  ;;  %v2838_v24 = vadd.f32 %v2837_v21, %v2794_v16 }
 0x3b0   : > { %v2839_v26 = vpop.f32.mrf.mxu0  ;;  %v2925_v44 = vpop.f32.mrf.mxu1 }
 0x3b1   : > { %3028 = vst [vmem:[#allocation3 + $0x40] sm:$0xff] %v3016_v22  ;;  %v3017_v27 = vadd.f32 %v2838_v24, %v1880_v20  ;;  %v2840_v28 = vadd.f32 %v2839_v26, %v2796_v19 }
 0x3b2   : > { %v2841_v32 = vpop.f32.mrf.mxu0  ;;  %v2927_v52 = vpop.f32.mrf.mxu1 }
 0x3b3   : > { %3029 = vst [vmem:[#allocation3 + $0x8] sm:$0xff] %v3017_v27  ;;  %v3022_v59 = vadd.f32 %v2840_v28, %v1885_v25  ;;  %v2842_v33 = vadd.f32 %v2841_v32, %v2798_v29 }
 0x3b5   : > { %3034 = vst [vmem:[#allocation3 + $0x10] sm:$0xff] %v3022_v59  ;;  %v3023_v34 = vadd.f32 %v2842_v33, %v1886_v30 }
 0x3b7   : > { %3035 = vst [vmem:[#allocation3 + $0x38] sm:$0xff] %v3023_v34 }
 0x3ec   : > { %v2878_v40 = vpop.f32.mrf.mxu0  ;;  %v2964_v58 = vpop.f32.mrf.mxu1 }
 0x3ed   : > { %v2922_v41 = vadd.f32 %v2921_v35, %v2878_v40 }
 0x3ee   : > { %v2880_v31 = vpop.f32.mrf.mxu0  ;;  %v2966_v60 = vpop.f32.mrf.mxu1 }
 0x3ef   : > { %v3018_v46 = vadd.f32 %v2922_v41, %v1881_v38  ;;  %v2924_v47 = vadd.f32 %v2923_v37, %v2880_v31 }
 0x3f0   : > { %v2882_v49 = vpop.f32.mrf.mxu0  ;;  %v2968_v0 = vpop.f32.mrf.mxu1 }
 0x3f1   : > { %3030 = vst [vmem:[#allocation3 + $0x20] sm:$0xff] %v3018_v46  ;;  %v3019_v50 = vadd.f32 %v2924_v47, %v1882_v45  ;;  %v2926_v51 = vadd.f32 %v2925_v44, %v2882_v49 }
 0x3f2   : > { %v2884_v54 = vpop.f32.mrf.mxu0  ;;  %v2970_v8 = vpop.f32.mrf.mxu1 }
 0x3f3   : > { %3031 = vst [vmem:[#allocation3 + $0x58] sm:$0xff] %v3019_v50  ;;  %v3024_v55 = vadd.f32 %v2926_v51, %v1887_v48  ;;  %v2928_v56 = vadd.f32 %v2927_v52, %v2884_v54 }
 0x3f5   : > { %3036 = vst [vmem:[#allocation3 + $0x48] sm:$0xff] %v3024_v55  ;;  %v3025_v57 = vadd.f32 %v2928_v56, %v1888_v53 }
 0x3f7   : > { %3037 = vst [vmem:[#allocation3 + $0x50] sm:$0xff] %v3025_v57 }
 0x40c   : > { %v3007_v62 = vpop.f32.mrf.mxu0 }
 0x40d   : > { %v3008_v63 = vadd.f32 %v3007_v62, %v2964_v58 }
 0x40e   : > { %v3009_v2 = vpop.f32.mrf.mxu0 }
 0x40f   : > { %v3020_v3 = vadd.f32 %v3008_v63, %v1883_v61  ;;  %v3010_v4 = vadd.f32 %v3009_v2, %v2966_v60 }
 0x410   : > { %v3011_v6 = vpop.f32.mrf.mxu0 }
 0x411   : > { %3032 = vst [vmem:[#allocation3 + $0x28] sm:$0xff] %v3020_v3  ;;  %v3021_v12 = vadd.f32 %v3010_v4, %v1884_v1  ;;  %v3012_v7 = vadd.f32 %v3011_v6, %v2968_v0 }
 0x412   : > { %v3013_v9 = vpop.f32.mrf.mxu0 }
 0x413   : > { %3033 = vst [vmem:[#allocation3 + $0x30] sm:$0xff] %v3021_v12  ;;  %v3026_v10 = vadd.f32 %v3012_v7, %v1889_v5  ;;  %v3014_v11 = vadd.f32 %v3013_v9, %v2970_v8  ;;  %3043 = sbr.rel (%p3697_p3) target bundleno = 1265 (0x4f1), region = 76 }
 0x415   : > { %3038 = vst [vmem:[#allocation3] sm:$0xff] %v3026_v10  ;;  %v3027_v13 = vadd.f32 %v3014_v11, %v1890_v36 }
 0x417   : > { %3039 = vst [vmem:[#allocation3 + $0x18] sm:$0xff] %v3027_v13 }
 0x418   : > { %v3047_v15 = vld [vmem:[#allocation3 + $0x8] sm:$0xff]  ;;  %v3053_v16 = vld [vmem:[#allocation3 + $0x38] sm:$0xff]  ;;  %v3046_v17 = vld [vmem:[#allocation3 + $0x40] sm:$0xff]  ;;  %v4567_v19 = vmov 0   ;;  %vm3101_vm1 = vcmask 130048   ;;  %v3080_v38 = vsub.s32 3, %v5040_v39 }
 0x419   : > { %v3059_v14 = vpack.c.bf16 %v3053_v16, %v3047_v15  ;;  %v3052_v18 = vld [vmem:[#allocation3 + $0x10] sm:$0xff]  ;;  %3137 = vmatprep.mubr.bf16.mxu0 %v4567_v19  ;;  %v3049_v20 = vld [vmem:[#allocation3 + $0x58] sm:$0xff]  ;;  %3180 = vmatprep.mubr.bf16.mxu1 %v4567_v19  ;;  %v4313_v25 = vld [vmem:[#allocation4] sm:$0xff]   ;;  %v3084_v46 = vsub.s32 4, %v5040_v39 }
 0x41a   : > { %v3055_v21 = vld [vmem:[#allocation3 + $0x50] sm:$0xff]  ;;  %v3058_v22 = vpack.c.bf16 %v3052_v18, %v3046_v17  ;;  %v3048_v26 = vld [vmem:[#allocation3 + $0x20] sm:$0xff]  ;;  %v3054_v27 = vld [vmem:[#allocation3 + $0x48] sm:$0xff] }
 0x41b   : > { %v3061_v24 = vpack.c.bf16 %v3055_v21, %v3049_v20  ;;  %3119 = vmatprep.subr.bf16.mxu0 %v3059_v14  ;;  %v3051_v28 = vld [vmem:[#allocation3 + $0x30] sm:$0xff]  ;;  %v3060_v29 = vpack.c.bf16 %v3054_v27, %v3048_v26  ;;  %v3050_v32 = vld [vmem:[#allocation3 + $0x28] sm:$0xff]  ;;  %v3064_v35 = vld [vmem:[#allocation12] sm:$0x3f] }
 0x41c   : > { %3120 = vmatpush1.bf16.msra.mxu0 %v3058_v22  ;;  %v3056_v59 = vld [vmem:[#allocation3] sm:$0xff]  ;;  %v3069_v37 = vrot.slane %v3064_v35, %v810_v43  ;;  %v3073_v40 = vrot.slane %v3064_v35, %v814_v42  ;;  %v3077_v41 = vrot.slane %v3064_v35, %v818_v23  ;;  %v3081_v31 = vrot.slane %v3064_v35, %v3080_v38 }
 0x41d   : > { %3162 = vmatprep.subr.bf16.mxu1 %v3061_v24  ;;  %v3062_v34 = vpack.c.bf16 %v3056_v59, %v3050_v32  ;;  %v3088_v43 = vsub.s32 5, %v5040_v39  ;;  %v3085_v54 = vrot.slane %v3064_v35, %v3084_v46 }
 0x41e   : > { %v3057_v30 = vld [vmem:[#allocation3 + $0x18] sm:$0xff]  ;;  %3163 = vmatpush1.bf16.msra.mxu1 %v3060_v29 }
 0x41f   : > { %v3063_v33 = vpack.c.bf16 %v3057_v30, %v3051_v28  ;;  %3699 = vmatmul.mubr.msk.bf16.vlgmr.msra.gmra.mxu0 %vm3101_vm1, %v4313_v25  ;;  %v3089_v58 = vrot.slane %v3064_v35, %v3088_v43 }
 0x420   : > { %3223 = vmatprep.mubr.bf16.mxu0 %v4567_v19 }
 0x421   : > { %3205 = vmatprep.subr.bf16.mxu0 %v3063_v33  ;;  %3700 = vmatmul.mubr.msk.bf16.vlgmr.msra.gmra.mxu1 %vm3101_vm1, %v4313_v25 }
 0x422   : > { %3206 = vmatpush1.bf16.msra.mxu0 %v3062_v34 }
 0x427   : > { %3701 = vmatmul.mubr.msk.bf16.vlgmr.msra.gmra.mxu0 %vm3101_vm1, %v4313_v25 }
 0x4df   : > { %v3139_v44 = vpop.f32.mrf.mxu0 }
 0x4e0   : > { %v3140_v45 = vadd.f32 %v3139_v44, %v3069_v37 }
 0x4e1   : > { %v3141_v47 = vpop.f32.mrf.mxu0  ;;  %v3182_v48 = vpop.f32.mrf.mxu1 }
 0x4e2   : > { %3234 = vst [vmem:[#allocation13] sm:$0xff] %v3140_v45  ;;  %v3142_v49 = vadd.f32 %v3141_v47, %v3073_v40  ;;  %v3183_v50 = vadd.f32 %v3182_v48, %v3077_v41 }
 0x4e3   : > { %v3143_v51 = vpop.f32.mrf.mxu0  ;;  %v3184_v52 = vpop.f32.mrf.mxu1 }
 0x4e4   : > { %3235 = vst [vmem:[#allocation13 + $0x8] sm:$0xff] %v3142_v49  ;;  %3236 = vst [vmem:[#allocation13 + $0x10] sm:$0xff] %v3183_v50  ;;  %v3144_v42 = vadd.f32 %v3143_v51, %v3069_v37  ;;  %v3185_v53 = vadd.f32 %v3184_v52, %v3081_v31 }
 0x4e5   : > { %v3145_v23 = vpop.f32.mrf.mxu0  ;;  %v3186_v55 = vpop.f32.mrf.mxu1 }
 0x4e6   : > { %3240 = vst [vmem:[#allocation13 + $0x30] sm:$0xff] %v3144_v42  ;;  %3237 = vst [vmem:[#allocation13 + $0x18] sm:$0xff] %v3185_v53  ;;  %v3146_v56 = vadd.f32 %v3145_v23, %v3073_v40  ;;  %v3187_v57 = vadd.f32 %v3186_v55, %v3077_v41 }
 0x4e7   : > { %v3225_v60 = vpop.f32.mrf.mxu0  ;;  %v3188_v61 = vpop.f32.mrf.mxu1 }
 0x4e8   : > { %3241 = vst [vmem:[#allocation13 + $0x38] sm:$0xff] %v3146_v56  ;;  %3242 = vst [vmem:[#allocation13 + $0x40] sm:$0xff] %v3187_v57  ;;  %v3226_v62 = vadd.f32 %v3225_v60, %v3085_v54  ;;  %v3189_v39 = vadd.f32 %v3188_v61, %v3081_v31 }
 0x4e9   : > { %v3227_v63 = vpop.f32.mrf.mxu0 }
 0x4ea   : > { %3238 = vst [vmem:[#allocation13 + $0x20] sm:$0xff] %v3226_v62  ;;  %3243 = vst [vmem:[#allocation13 + $0x48] sm:$0xff] %v3189_v39  ;;  %v3228_v0 = vadd.f32 %v3227_v63, %v3089_v58 }
 0x4eb   : > { %v3229_v1 = vpop.f32.mrf.mxu0 }
 0x4ec   : > { %3239 = vst [vmem:[#allocation13 + $0x28] sm:$0xff] %v3228_v0  ;;  %v3230_v2 = vadd.f32 %v3229_v1, %v3085_v54 }
 0x4ed   : > { %v3231_v3 = vpop.f32.mrf.mxu0 }
 0x4ee   : > { %3244 = vst [vmem:[#allocation13 + $0x50] sm:$0xff] %v3230_v2  ;;  %v3232_v4 = vadd.f32 %v3231_v3, %v3089_v58 }
 0x4f0   : > { %3245 = vst [vmem:[#allocation13 + $0x58] sm:$0xff] %v3232_v4 }
 0x4f1 PF: > { %p3836_p6 = scmp.eq.s32.totalorder %s4625_s25, 1  ;;  %s4568_s7 = smov [#allocation13]  }
 0x4f2   : > { %s3252_s24 = sshll.u32 %s4568_s7, 4  ;;  %s3253_s24 = int_to_ptr.vmem [resolvable:$true] %s3252_s24 }
 0x4f3   : > { %s4476_s9 = scalar_lea.vmem %s3253_s24, 1536  ;;  %p4483_p5 = scmp.lt.s32.totalorder %s3253_s24, %s3253_s24 }
 0x4f4   : > { %p4477_p10 = scmp.ne.s32.totalorder %s3253_s24, %s4476_s9  ;;  %p4484_p4 = scmp.lt.s32.totalorder %s4476_s9, %s4476_s9 }
 0x4f6   : > { %p4478_p7 = pnand %p4477_p10, %p3836_p6  ;;  %p4485_p9 = por %p4484_p4, %p4483_p5 }
 0x4f8   : > { %p4479_p11 = pneg %p4478_p7 }
 0x4fa   : > { %p4486_p8 = pnand %p4485_p9, %p4479_p11 }
 0x4fc   : > { %4489 = shalt.err (!%p4486_p8)
}
 0x4fd   : > { %s4569_s29 = smov 768   ;;  %s4570_s19 = smov 48  }
 0x4fe   : > { %3805 = dma.vmem_to_hbm [thread:$0]  (%p3836_p6), %s3253_s24, 1536, %s5205_s6, [#allocation6], %s4569_s29, %s4569_s29, %s4570_s19  }
 0x4ff   : > { %4533 = dma.done.wait (%p3836_p6), [#allocation6], 1536  }
 0x500   : > { %4535 = vsyncadd (%p3836_p6), [#allocation6], 4294965760 }
 0x501 PF: > { %s5242_s24 = sld [smem:[#allocation20_spill]]  ;;  %s5245_s21 = smov %s4542_s22 }
 0x502   : > { %s5243_s11 = sld [smem:[#allocation19_spill]] }
 0x503   : > { %s5244_s23 = sld [smem:[#allocation21_spill]] }
 0x507   : > { %p16_p12 = scmp.ge.s32.totalorder %s5242_s24, 4  }
 0x508   : > { %s5246_s22 = smov %s5243_s11 }
 0x509   :  { %18 = sbr.rel (!%p16_p12) target bundleno = 7 (0x7), region = 122 }
 0x50e   :  { %3268 = vsyncpa [#allocation5], 1 }
 0x50f   :  { %3270 = vsyncpa [#allocation5 + $0x1], 1 }
 0x510   :  { %3271 = vsyncpa [#allocation8], 1 }
 0x511   :  { %3272 = vsyncpa [#allocation6], 1 }
 0x512   :  { %3274 = vsyncpa [#allocation6 + $0x1], 1 }

</bundles_post_ra>
